<compile_context>
chip_gen: v7x
topology: tpu7x:2x2x1
jax: 0.10.0
libtpu: 0.0.40
codegen_flags: <defaults>
</compile_context>

<pallas_src>
import functools

import jax
import jax.numpy as jnp
from jax import lax
from jax.experimental import pallas as pl
from jax.experimental.pallas import tpu as pltpu


def _mobile_block_kernel(x_ref, masks_ref, w1_ref, w2_ref, w3_ref,
                         b1_ref, b2_ref, b3_ref, o_ref, *, W):
    # x_ref / o_ref: (C, L) with L = H*W (one image; channels on sublanes,
    # pixels on lanes).
    _, L = x_ref.shape
    x = x_ref[...]                                                   # (C, L)

    # ---- Stage 1: 1x1 expand (BN1 scale pre-folded) + bias + ReLU ---------
    t = jnp.dot(w1_ref[...], x, preferred_element_type=jnp.float32)  # (Cm, L)
    t = jnp.maximum(t + b1_ref[...], 0.0)

    # ---- Stage 2: 3x3 depthwise, padding=1 (BN2 scale pre-folded) + bias --
    # Horizontal combine then vertical shift: 4 lane rolls + 4 mask muls.
    # Every lane that wraps around in a roll is zeroed by the h/w edge masks.
    masks = masks_ref[...]                                           # (4, L)
    m_wl = masks[0:1, :]          # w >= 1      (left  tap valid)
    m_wr = masks[1:2, :]          # w <= W-2    (right tap valid)
    m_ht = masks[2:3, :]          # h >= 1      (top   row valid)
    m_hb = masks[3:4, :]          # h <= H-2    (bottom row valid)

    w2 = w2_ref[...]                                                 # (9, Cm, 1)

    # lsh[i] = t[i-1]  (input at (h, w-1)),  rsh[i] = t[i+1]  (h, w+1)
    lsh = m_wl * pltpu.roll(t, 1, 1)
    rsh = m_wr * pltpu.roll(t, L - 1, 1)

    def hrow(r):
        # per-channel tap weights, column k = r*3 + s
        return w2[r * 3 + 0] * lsh + w2[r * 3 + 1] * t + w2[r * 3 + 2] * rsh

    row_top = hrow(0)     # uses input row h-1 after vertical shift
    row_mid = hrow(1)
    row_bot = hrow(2)     # uses input row h+1 after vertical shift

    acc = row_mid + b2_ref[...]
    acc = acc + m_ht * pltpu.roll(row_top, W, 1)        # acc[i] += row_top[i-W]
    acc = acc + m_hb * pltpu.roll(row_bot, L - W, 1)    # acc[i] += row_bot[i+W]

    # ---- Stage 3: 1x1 project (BN3 scale pre-folded) + bias + res + ReLU --
    u = jnp.dot(w3_ref[...], acc, preferred_element_type=jnp.float32)  # (C, L)
    o_ref[...] = jnp.maximum(u + b3_ref[...] + x, 0.0).astype(o_ref.dtype)


def make_edge_masks(H, W):
    """(4, H*W) float masks: [w>=1, w<=W-2, h>=1, h<=H-2]."""
    h_idx = jnp.arange(H, dtype=jnp.int32)
    w_idx = jnp.arange(W, dtype=jnp.int32)
    ones_h = jnp.ones((H,), jnp.float32)
    ones_w = jnp.ones((W,), jnp.float32)
    m_wl = (w_idx >= 1).astype(jnp.float32)
    m_wr = (w_idx <= W - 2).astype(jnp.float32)
    m_ht = (h_idx >= 1).astype(jnp.float32)
    m_hb = (h_idx <= H - 2).astype(jnp.float32)
    return jnp.stack([
        jnp.outer(ones_h, m_wl).reshape(-1),
        jnp.outer(ones_h, m_wr).reshape(-1),
        jnp.outer(m_ht, ones_w).reshape(-1),
        jnp.outer(m_hb, ones_w).reshape(-1),
    ], axis=0)


def mobile_block_pallas(x_nchw, params):
    """x_nchw: (N, C, H, W) float32.  Returns (N, C, H, W)."""
    w1f, w2f, w3f, b1, b2, b3 = params
    N, C, H, W = x_nchw.shape
    Cm = w1f.shape[0]
    HW = H * W

    masks = make_edge_masks(H, W)
    x3 = x_nchw.reshape(N, C, HW)          # contiguous reshape — no HBM pass

    kernel = functools.partial(_mobile_block_kernel, W=W)
    grid_spec = pltpu.PrefetchScalarGridSpec(
        num_scalar_prefetch=0,
        grid=(N,),
        in_specs=[
            pl.BlockSpec((pl.Squeezed(), C, HW), lambda i: (i, 0, 0)),  # x
            pl.BlockSpec((4, HW), lambda i: (0, 0)),          # edge masks
            pl.BlockSpec((Cm, C), lambda i: (0, 0)),           # w1 (BN1 folded)
            pl.BlockSpec((9, Cm, 1), lambda i: (0, 0, 0)),     # w2 taps (BN2 folded)
            pl.BlockSpec((C, Cm), lambda i: (0, 0)),           # w3 (BN3 folded)
            pl.BlockSpec((Cm, 1), lambda i: (0, 0)),           # bn1 bias
            pl.BlockSpec((Cm, 1), lambda i: (0, 0)),           # bn2 bias
            pl.BlockSpec((C, 1), lambda i: (0, 0)),            # bn3 bias
        ],
        out_specs=pl.BlockSpec((pl.Squeezed(), C, HW), lambda i: (i, 0, 0)),
    )

    out3 = pl.pallas_call(
        kernel,
        out_shape=jax.ShapeDtypeStruct((N, C, HW), x_nchw.dtype),
        grid_spec=grid_spec,
        compiler_params=pltpu.CompilerParams(
            dimension_semantics=("parallel",)),
    )(x3, masks, w1f, w2f, w3f, b1, b2, b3)

    return out3.reshape(N, C, H, W)


# --------------------------- parameter setup ------------------------------
def make_params(key, inplanes):
    """Deterministic parameters matching MobileBlock(inplanes, stride=1)."""
    C = inplanes
    Cm = 6 * inplanes
    eps = 1e-5
    ks = jax.random.split(key, 12)

    # conv weights in PyTorch layouts
    w1_oihw = jax.random.normal(ks[0], (Cm, C, 1, 1), jnp.float32) * 0.1
    w2_oihw = jax.random.normal(ks[1], (Cm, 1, 3, 3), jnp.float32) * 0.1
    w3_oihw = jax.random.normal(ks[2], (C, Cm, 1, 1), jnp.float32) * 0.1

    def bn(kg, kb, km, kv, c):
        gamma = 1.0 + 0.1 * jax.random.normal(kg, (c,), jnp.float32)
        beta = 0.1 * jax.random.normal(kb, (c,), jnp.float32)
        mean = 0.1 * jax.random.normal(km, (c,), jnp.float32)
        var = jax.random.uniform(kv, (c,), jnp.float32, 0.5, 1.5)
        return gamma, beta, mean, var

    bn1 = bn(ks[3], ks[4], ks[5], ks[6], Cm)
    bn2 = bn(ks[7], ks[8], ks[9], ks[10], Cm)
    bn3 = bn(ks[11], ks[3], ks[4], ks[5], C)

    def fold(gamma, beta, mean, var):
        scale = gamma / jnp.sqrt(var + eps)
        bias = beta - mean * scale
        return scale, bias

    s1, b1 = fold(*bn1)
    s2, b2 = fold(*bn2)
    s3, b3 = fold(*bn3)

    # Fold BN scales into the conv weights (kernel only adds the biases).
    w1f = w1_oihw.reshape(Cm, C) * s1[:, None]                  # (Cm, C)
    w2f = (w2_oihw.reshape(Cm, 9) * s2[:, None]).T.reshape(9, Cm, 1)  # (9, Cm, 1)
    w3f = w3_oihw.reshape(C, Cm) * s3[:, None]                  # (C, Cm)

    kernel_params = (w1f, w2f, w3f,
                     b1.reshape(Cm, 1), b2.reshape(Cm, 1), b3.reshape(C, 1))
    torch_like = (w1_oihw, w2_oihw, w3_oihw, bn1, bn2, bn3, eps)
    return kernel_params, torch_like


# ---------------------- pure-JAX reference (NCHW) --------------------------
def mobile_block_ref(x, torch_like):
    w1, w2, w3, bn1, bn2, bn3, eps = torch_like
    Cm = w1.shape[0]

    def bn_apply(y, p):
        gamma, beta, mean, var = p
        sh = (1, -1, 1, 1)
        return (y - mean.reshape(sh)) / jnp.sqrt(var.reshape(sh) + eps) \
            * gamma.reshape(sh) + beta.reshape(sh)

    dn = ("NCHW", "OIHW", "NCHW")
    out = lax.conv_general_dilated(x, w1, (1, 1), "VALID", dimension_numbers=dn)
    out = jax.nn.relu(bn_apply(out, bn1))
    out = lax.conv_general_dilated(out, w2, (1, 1), ((1, 1), (1, 1)),
                                   dimension_numbers=dn, feature_group_count=Cm)
    out = bn_apply(out, bn2)
    out = lax.conv_general_dilated(out, w3, (1, 1), "VALID", dimension_numbers=dn)
    out = bn_apply(out, bn3)
    return jax.nn.relu(out + x)


if __name__ == "__main__":
    key = jax.random.PRNGKey(0)
    kx, kp = jax.random.split(key)

    N, inplanes, H, W = 2, 8, 16, 16        # small shapes; 6*inplanes = 48
    x = jax.random.normal(kx, (N, inplanes, H, W), jnp.float32)

    kernel_params, torch_like = make_params(kp, inplanes)

    out = mobile_block_pallas(x, kernel_params)
    out = jax.block_until_ready(out)

    ref = jax.block_until_ready(mobile_block_ref(x, torch_like))
    max_err = float(jnp.max(jnp.abs(out - ref)))
    assert out.shape == (N, inplanes, H, W)
    assert max_err < 1e-3, f"max abs error {max_err}"

    print("KERNEL_OK")
</pallas_src>

<mosaic_0001>
module attributes {stable_mosaic.version = 11 : i64} {
  func.func @_mobile_block_kernel(%arg0: i32, %arg1: memref<1x8x256xf32, #tpu.memory_space<vmem>>, %arg2: memref<4x256xf32, #tpu.memory_space<vmem>>, %arg3: memref<48x8xf32, #tpu.memory_space<vmem>>, %arg4: memref<9x48x1xf32, #tpu.memory_space<vmem>>, %arg5: memref<8x48xf32, #tpu.memory_space<vmem>>, %arg6: memref<48x1xf32, #tpu.memory_space<vmem>>, %arg7: memref<48x1xf32, #tpu.memory_space<vmem>>, %arg8: memref<8x1xf32, #tpu.memory_space<vmem>>, %arg9: memref<1x8x256xf32, #tpu.memory_space<vmem>>) attributes {dimension_semantics = [#tpu.dimension_semantics<parallel>], iteration_bounds = array<i64: 2>, scalar_prefetch = 0 : i64, scratch_operands = 0 : i64, tpu.core_type = #tpu.core_type<tc>, window_params = [{transform_indices = @transform_0, window_bounds = array<i64: 1, 8, 256>}, {pipeline_mode = #tpu.pipeline_mode<synchronous>, transform_indices = @transform_1, window_bounds = array<i64: 4, 256>}, {pipeline_mode = #tpu.pipeline_mode<synchronous>, transform_indices = @transform_2, window_bounds = array<i64: 48, 8>}, {pipeline_mode = #tpu.pipeline_mode<synchronous>, transform_indices = @transform_3, window_bounds = array<i64: 9, 48, 1>}, {pipeline_mode = #tpu.pipeline_mode<synchronous>, transform_indices = @transform_4, window_bounds = array<i64: 8, 48>}, {pipeline_mode = #tpu.pipeline_mode<synchronous>, transform_indices = @transform_5, window_bounds = array<i64: 48, 1>}, {pipeline_mode = #tpu.pipeline_mode<synchronous>, transform_indices = @transform_6, window_bounds = array<i64: 48, 1>}, {pipeline_mode = #tpu.pipeline_mode<synchronous>, transform_indices = @transform_7, window_bounds = array<i64: 8, 1>}, {transform_indices = @transform_8, window_bounds = array<i64: 1, 8, 256>}]} {
    %c0 = arith.constant 0 : index
    %c0_0 = arith.constant 0 : index
    %c0_1 = arith.constant 0 : index
    %0 = vector.load %arg1[%c0, %c0_0, %c0_1] : memref<1x8x256xf32, #tpu.memory_space<vmem>>, vector<1x8x256xf32>
    %1 = vector.shape_cast %0 : vector<1x8x256xf32> to vector<8x256xf32>
    %c0_2 = arith.constant 0 : index
    %c0_3 = arith.constant 0 : index
    %2 = vector.load %arg3[%c0_2, %c0_3] : memref<48x8xf32, #tpu.memory_space<vmem>>, vector<48x8xf32>
    %cst = arith.constant dense<0.000000e+00> : vector<48x256xf32>
    %3 = tpu.matmul %2, %1, %cst {dimension_numbers = #tpu.dot_dimension_numbers<[1], [0], [0], [1], [0, 0, 1, 1], [], []>} : vector<48x8xf32>, vector<8x256xf32>, vector<48x256xf32> -> vector<48x256xf32>
    %c0_4 = arith.constant 0 : index
    %c0_5 = arith.constant 0 : index
    %4 = vector.load %arg6[%c0_4, %c0_5] : memref<48x1xf32, #tpu.memory_space<vmem>>, vector<48x1xf32>
    %5 = vector.broadcast %4 : vector<48x1xf32> to vector<48x256xf32>
    %6 = arith.addf %3, %5 : vector<48x256xf32>
    %cst_6 = arith.constant 0.000000e+00 : f32
    %7 = vector.broadcast %cst_6 : f32 to vector<48x256xf32>
    %8 = arith.maximumf %6, %7 : vector<48x256xf32>
    %c0_7 = arith.constant 0 : index
    %c0_8 = arith.constant 0 : index
    %9 = vector.load %arg2[%c0_7, %c0_8] : memref<4x256xf32, #tpu.memory_space<vmem>>, vector<4x256xf32>
    %10 = vector.extract_strided_slice %9 {offsets = [0, 0], sizes = [1, 256], strides = [1, 1]} : vector<4x256xf32> to vector<1x256xf32>
    %11 = vector.extract_strided_slice %9 {offsets = [1, 0], sizes = [1, 256], strides = [1, 1]} : vector<4x256xf32> to vector<1x256xf32>
    %12 = vector.extract_strided_slice %9 {offsets = [2, 0], sizes = [1, 256], strides = [1, 1]} : vector<4x256xf32> to vector<1x256xf32>
    %13 = vector.extract_strided_slice %9 {offsets = [3, 0], sizes = [1, 256], strides = [1, 1]} : vector<4x256xf32> to vector<1x256xf32>
    %c0_9 = arith.constant 0 : index
    %c0_10 = arith.constant 0 : index
    %c0_11 = arith.constant 0 : index
    %14 = vector.load %arg4[%c0_9, %c0_10, %c0_11] : memref<9x48x1xf32, #tpu.memory_space<vmem>>, vector<9x48x1xf32>
    %c1_i32 = arith.constant 1 : i32
    %15 = tpu.dynamic_rotate %8 by %c1_i32 dim 1 : vector<48x256xf32>, i32 -> vector<48x256xf32>
    %16 = vector.broadcast %10 : vector<1x256xf32> to vector<48x256xf32>
    %17 = arith.mulf %16, %15 : vector<48x256xf32>
    %c255_i32 = arith.constant 255 : i32
    %18 = tpu.dynamic_rotate %8 by %c255_i32 dim 1 : vector<48x256xf32>, i32 -> vector<48x256xf32>
    %19 = vector.broadcast %11 : vector<1x256xf32> to vector<48x256xf32>
    %20 = arith.mulf %19, %18 : vector<48x256xf32>
    %21 = vector.extract_strided_slice %14 {offsets = [0, 0, 0], sizes = [1, 48, 1], strides = [1, 1, 1]} : vector<9x48x1xf32> to vector<1x48x1xf32>
    %22 = vector.shape_cast %21 : vector<1x48x1xf32> to vector<48x1xf32>
    %23 = vector.broadcast %22 : vector<48x1xf32> to vector<48x256xf32>
    %24 = arith.mulf %23, %17 : vector<48x256xf32>
    %25 = vector.extract_strided_slice %14 {offsets = [1, 0, 0], sizes = [1, 48, 1], strides = [1, 1, 1]} : vector<9x48x1xf32> to vector<1x48x1xf32>
    %26 = vector.shape_cast %25 : vector<1x48x1xf32> to vector<48x1xf32>
    %27 = vector.broadcast %26 : vector<48x1xf32> to vector<48x256xf32>
    %28 = arith.mulf %27, %8 : vector<48x256xf32>
    %29 = arith.addf %24, %28 : vector<48x256xf32>
    %30 = vector.extract_strided_slice %14 {offsets = [2, 0, 0], sizes = [1, 48, 1], strides = [1, 1, 1]} : vector<9x48x1xf32> to vector<1x48x1xf32>
    %31 = vector.shape_cast %30 : vector<1x48x1xf32> to vector<48x1xf32>
    %32 = vector.broadcast %31 : vector<48x1xf32> to vector<48x256xf32>
    %33 = arith.mulf %32, %20 : vector<48x256xf32>
    %34 = arith.addf %29, %33 : vector<48x256xf32>
    %35 = vector.extract_strided_slice %14 {offsets = [3, 0, 0], sizes = [1, 48, 1], strides = [1, 1, 1]} : vector<9x48x1xf32> to vector<1x48x1xf32>
    %36 = vector.shape_cast %35 : vector<1x48x1xf32> to vector<48x1xf32>
    %37 = vector.broadcast %36 : vector<48x1xf32> to vector<48x256xf32>
    %38 = arith.mulf %37, %17 : vector<48x256xf32>
    %39 = vector.extract_strided_slice %14 {offsets = [4, 0, 0], sizes = [1, 48, 1], strides = [1, 1, 1]} : vector<9x48x1xf32> to vector<1x48x1xf32>
    %40 = vector.shape_cast %39 : vector<1x48x1xf32> to vector<48x1xf32>
    %41 = vector.broadcast %40 : vector<48x1xf32> to vector<48x256xf32>
    %42 = arith.mulf %41, %8 : vector<48x256xf32>
    %43 = arith.addf %38, %42 : vector<48x256xf32>
    %44 = vector.extract_strided_slice %14 {offsets = [5, 0, 0], sizes = [1, 48, 1], strides = [1, 1, 1]} : vector<9x48x1xf32> to vector<1x48x1xf32>
    %45 = vector.shape_cast %44 : vector<1x48x1xf32> to vector<48x1xf32>
    %46 = vector.broadcast %45 : vector<48x1xf32> to vector<48x256xf32>
    %47 = arith.mulf %46, %20 : vector<48x256xf32>
    %48 = arith.addf %43, %47 : vector<48x256xf32>
    %49 = vector.extract_strided_slice %14 {offsets = [6, 0, 0], sizes = [1, 48, 1], strides = [1, 1, 1]} : vector<9x48x1xf32> to vector<1x48x1xf32>
    %50 = vector.shape_cast %49 : vector<1x48x1xf32> to vector<48x1xf32>
    %51 = vector.broadcast %50 : vector<48x1xf32> to vector<48x256xf32>
    %52 = arith.mulf %51, %17 : vector<48x256xf32>
    %53 = vector.extract_strided_slice %14 {offsets = [7, 0, 0], sizes = [1, 48, 1], strides = [1, 1, 1]} : vector<9x48x1xf32> to vector<1x48x1xf32>
    %54 = vector.shape_cast %53 : vector<1x48x1xf32> to vector<48x1xf32>
    %55 = vector.broadcast %54 : vector<48x1xf32> to vector<48x256xf32>
    %56 = arith.mulf %55, %8 : vector<48x256xf32>
    %57 = arith.addf %52, %56 : vector<48x256xf32>
    %58 = vector.extract_strided_slice %14 {offsets = [8, 0, 0], sizes = [1, 48, 1], strides = [1, 1, 1]} : vector<9x48x1xf32> to vector<1x48x1xf32>
    %59 = vector.shape_cast %58 : vector<1x48x1xf32> to vector<48x1xf32>
    %60 = vector.broadcast %59 : vector<48x1xf32> to vector<48x256xf32>
    %61 = arith.mulf %60, %20 : vector<48x256xf32>
    %62 = arith.addf %57, %61 : vector<48x256xf32>
    %c0_12 = arith.constant 0 : index
    %c0_13 = arith.constant 0 : index
    %63 = vector.load %arg7[%c0_12, %c0_13] : memref<48x1xf32, #tpu.memory_space<vmem>>, vector<48x1xf32>
    %64 = vector.broadcast %63 : vector<48x1xf32> to vector<48x256xf32>
    %65 = arith.addf %48, %64 : vector<48x256xf32>
    %c16_i32 = arith.constant 16 : i32
    %66 = tpu.dynamic_rotate %34 by %c16_i32 dim 1 : vector<48x256xf32>, i32 -> vector<48x256xf32>
    %67 = vector.broadcast %12 : vector<1x256xf32> to vector<48x256xf32>
    %68 = arith.mulf %67, %66 : vector<48x256xf32>
    %69 = arith.addf %65, %68 : vector<48x256xf32>
    %c240_i32 = arith.constant 240 : i32
    %70 = tpu.dynamic_rotate %62 by %c240_i32 dim 1 : vector<48x256xf32>, i32 -> vector<48x256xf32>
    %71 = vector.broadcast %13 : vector<1x256xf32> to vector<48x256xf32>
    %72 = arith.mulf %71, %70 : vector<48x256xf32>
    %73 = arith.addf %69, %72 : vector<48x256xf32>
    %c0_14 = arith.constant 0 : index
    %c0_15 = arith.constant 0 : index
    %74 = vector.load %arg5[%c0_14, %c0_15] : memref<8x48xf32, #tpu.memory_space<vmem>>, vector<8x48xf32>
    %cst_16 = arith.constant dense<0.000000e+00> : vector<8x256xf32>
    %75 = tpu.matmul %74, %73, %cst_16 {dimension_numbers = #tpu.dot_dimension_numbers<[1], [0], [0], [1], [0, 0, 1, 1], [], []>} : vector<8x48xf32>, vector<48x256xf32>, vector<8x256xf32> -> vector<8x256xf32>
    %c0_17 = arith.constant 0 : index
    %c0_18 = arith.constant 0 : index
    %76 = vector.load %arg8[%c0_17, %c0_18] : memref<8x1xf32, #tpu.memory_space<vmem>>, vector<8x1xf32>
    %77 = vector.broadcast %76 : vector<8x1xf32> to vector<8x256xf32>
    %78 = arith.addf %75, %77 : vector<8x256xf32>
    %79 = arith.addf %78, %1 : vector<8x256xf32>
    %cst_19 = arith.constant 0.000000e+00 : f32
    %80 = vector.broadcast %cst_19 : f32 to vector<8x256xf32>
    %81 = arith.maximumf %79, %80 : vector<8x256xf32>
    %c0_20 = arith.constant 0 : index
    %c0_21 = arith.constant 0 : index
    %c0_22 = arith.constant 0 : index
    %82 = vector.load %arg9[%c0_20, %c0_21, %c0_22] : memref<1x8x256xf32, #tpu.memory_space<vmem>>, vector<1x8x256xf32>
    %83 = vector.shape_cast %82 : vector<1x8x256xf32> to vector<8x256xf32>
    %84 = vector.shape_cast %81 : vector<8x256xf32> to vector<1x8x256xf32>
    tpu.vector_store %arg9[%c0_20, %c0_21, %c0_22], %84 {strides = array<i32>} : memref<1x8x256xf32, #tpu.memory_space<vmem>>, vector<1x8x256xf32>,
    return
  }
  func.func @transform_0(%arg0: i32) -> (i32, i32, i32) {
    %c0_i32 = arith.constant 0 : i32
    %c0_i32_0 = arith.constant 0 : i32
    %c0_i32_1 = arith.constant 0 : i32
    return %arg0, %c0_i32, %c0_i32_0 : i32, i32, i32
  }
  func.func @transform_1(%arg0: i32) -> (i32, i32) {
    %c0_i32 = arith.constant 0 : i32
    %c0_i32_0 = arith.constant 0 : i32
    %c0_i32_1 = arith.constant 0 : i32
    return %c0_i32, %c0_i32_0 : i32, i32
  }
  func.func @transform_2(%arg0: i32) -> (i32, i32) {
    %c0_i32 = arith.constant 0 : i32
    %c0_i32_0 = arith.constant 0 : i32
    %c0_i32_1 = arith.constant 0 : i32
    return %c0_i32, %c0_i32_0 : i32, i32
  }
  func.func @transform_3(%arg0: i32) -> (i32, i32, i32) {
    %c0_i32 = arith.constant 0 : i32
    %c0_i32_0 = arith.constant 0 : i32
    %c0_i32_1 = arith.constant 0 : i32
    %c0_i32_2 = arith.constant 0 : i32
    return %c0_i32, %c0_i32_0, %c0_i32_1 : i32, i32, i32
  }
  func.func @transform_4(%arg0: i32) -> (i32, i32) {
    %c0_i32 = arith.constant 0 : i32
    %c0_i32_0 = arith.constant 0 : i32
    %c0_i32_1 = arith.constant 0 : i32
    return %c0_i32, %c0_i32_0 : i32, i32
  }
  func.func @transform_5(%arg0: i32) -> (i32, i32) {
    %c0_i32 = arith.constant 0 : i32
    %c0_i32_0 = arith.constant 0 : i32
    %c0_i32_1 = arith.constant 0 : i32
    return %c0_i32, %c0_i32_0 : i32, i32
  }
  func.func @transform_6(%arg0: i32) -> (i32, i32) {
    %c0_i32 = arith.constant 0 : i32
    %c0_i32_0 = arith.constant 0 : i32
    %c0_i32_1 = arith.constant 0 : i32
    return %c0_i32, %c0_i32_0 : i32, i32
  }
  func.func @transform_7(%arg0: i32) -> (i32, i32) {
    %c0_i32 = arith.constant 0 : i32
    %c0_i32_0 = arith.constant 0 : i32
    %c0_i32_1 = arith.constant 0 : i32
    return %c0_i32, %c0_i32_0 : i32, i32
  }
  func.func @transform_8(%arg0: i32) -> (i32, i32, i32) {
    %c0_i32 = arith.constant 0 : i32
    %c0_i32_0 = arith.constant 0 : i32
    %c0_i32_1 = arith.constant 0 : i32
    return %arg0, %c0_i32, %c0_i32_0 : i32, i32, i32
  }
}

</mosaic_0001>

<bundles_post_ra>
// kernel: tpu_custom_call.1
= control target key start
LH: loop header
LB: loop body
LE: loop exit
PB: predicated region body
PF: predicated region fallthrough
CT: control target
= control target key end

     0   :  { %13 = vsyncpa [#allocation3], 0  ;;  %s2703_s0 = inlined_call_operand.vmem [shape: f32[2,8,256], index: 0, kind: input, shape index: {}]   ;;  %s2704_s1 = inlined_call_operand.vmem [shape: f32[4,256], index: 1, kind: input, shape index: {}]   ;;  %s2705_s2 = inlined_call_operand.vmem [shape: f32[48,8], index: 2, kind: input, shape index: {}]   ;;  %s2706_s3 = inlined_call_operand.vmem [shape: f32[9,48,1], index: 3, kind: input, shape index: {}]   ;;  %s2707_s4 = inlined_call_operand.vmem [shape: f32[8,48], index: 4, kind: input, shape index: {}]   ;;  %s2708_s5 = inlined_call_operand.vmem [shape: f32[48,1], index: 5, kind: input, shape index: {}]   ;;  %s2709_s6 = inlined_call_operand.vmem [shape: f32[48,1], index: 6, kind: input, shape index: {}]   ;;  %s2710_s7 = inlined_call_operand.vmem [shape: f32[8,1], index: 7, kind: input, shape index: {}]   ;;  %s2711_s8 = inlined_call_operand.hbm [shape: f32[2,8,256], index: 8, kind: output, shape index: {}]  }
   0x1   :  { %15 = vsyncpa [#allocation3 + $0x1], 0  ;;  %s1688_s27 = smov 0   ;;  %s1690_s28 = smov 0  }
   0x2   :  { %s1692_s29 = smov 0   ;;  %s1694_s30 = smov 0  }
   0x3 LB: > { %s1709_s9 = sadd.s32 4294967295, %s1634_s30   ;;  %s1490_s10 = sadd.s32 4294967294, %s1634_s30   ;;  %s1634_s30 = sphi %s1694_s30, %s2813_s30   ;;  %s1630_s29 = sphi %s1692_s29, %s2812_s29   ;;  %s1626_s28 = sphi %s1690_s28, %s2811_s28   ;;  %s1622_s27 = sphi %s1688_s27, %s2810_s27  }
   0x4   : > { %s1713_s11 = sadd.s32 1, %s1634_s30   ;;  %s201_s12 = sadd.s32 1, %s1630_s29 }
   0x5   : > { %s198_s13 = ssub.s32 %s1634_s30, %s1713_s11  ;;  %p211_p0 = scmp.ne.s32.totalorder %s1630_s29, %s1626_s28 }
   0x6   : > { %p199_p1 = scmp.eq.s32.totalorder %s198_s13, 0  ;;  %p212_p2 = scmp.eq.s32.totalorder %s1709_s9, 1 }
   0x7   : > { %p217_p3 = scmp.ne.s32.totalorder %s1626_s28, %s1622_s27  ;;  %p218_p4 = scmp.eq.s32.totalorder %s1490_s10, 1 }
   0x8   : > { %s1724_s14 = scalar_select %p199_p1, %s1630_s29, %s201_s12  }
   0x9   : > { %p1726_p5 = por %p212_p2, %p211_p0  ;;  %p1730_p6 = por %p218_p4, %p217_p3 }
   0xa   : > { %p1493_p7 = scmp.ge.s32.totalorder %s1634_s30, 1  ;;  %p265_p8 = scmp.lt.s32.totalorder %s1634_s30, 3 }
   0xc   : > { %p266_p9 = pnand %p1493_p7, %p265_p8 }
   0xe   : > { %269 = sbr.rel (%p266_p9) target bundleno = 789 (0x315), region = 52 }
  0x15   : > { %v314_v0 = vld [vmem:[%s2708_s5 + $0x10] sm:$0xff]  ;;  %v312_v1 = vld [vmem:[%s2708_s5] sm:$0xff]  ;;  %p299_p10 = scmp.lt.s32.totalorder %s1709_s9, 1  ;;  %v1636_v2 = vmov 0   ;;  %v315_v3 = vld [vmem:[%s2708_s5 + $0x18] sm:$0xff]  ;;  %v1637_v5 = vmov 0.0  }
  0x16   : > { %1569 = vset.pattern.permute.xlu1 %v1636_v2  ;;  %1568 = vset.pattern.permute.xlu0 %v1636_v2  ;;  %v313_v4 = vld [vmem:[%s2708_s5 + $0x8] sm:$0xff]  ;;  %v306_v8 = vld [vmem:[%s2705_s2] sm:$0xff]  ;;  %vm348_vm0 = vcmask 64512   ;;  %v308_v14 = vld [vmem:[%s2705_s2 + $0x10] sm:$0xff]  ;;  %s1638_s25 = smov 1   ;;  %vm1335_vm5 = vcmask 392192  }
  0x17   : > { %330 = vperm.xlu1 %1569, %v314_v0   ;;  %320 = vperm.xlu0 %1568, %v312_v1   ;;  %s300_s21 = scalar_select %p299_p10, %s1709_s9, 1  ;;  %v317_v9 = vld [vmem:[%s2708_s5 + $0x28] sm:$0xff]  ;;  %v316_v10 = vld [vmem:[%s2708_s5 + $0x20] sm:$0xff]  ;;  %v488_v15 = vld [vmem:[%s2706_s3 + $0x38] sm:$0xff] }
  0x18   : > { %431 = vmatprep.mubr.f32.mxu0 %v1637_v5  ;;  %1403 = vmatprep.mubr.f32.mxu1 %v1637_v5  ;;  %v307_v11 = vld [vmem:[%s2705_s2 + $0x8] sm:$0xff]  ;;  %v481_v13 = vld [vmem:[%s2706_s3] sm:$0xff]  ;;  %v487_v16 = vld [vmem:[%s2706_s3 + $0x30] sm:$0xff]  ;;  %s296_s19 = sand.u32 1, %s1626_s28  }
  0x19   : > { %s1509_s26 = sshll.u32 %s300_s21, 4  ;;  %v482_v12 = vld [vmem:[%s2706_s3 + $0x8] sm:$0xff]  ;;  %v309_v17 = vld [vmem:[%s2705_s2 + $0x18] sm:$0xff]  ;;  %v493_v19 = vld [vmem:[%s2706_s3 + $0x60] sm:$0xff]  ;;  %s1494_s20 = sshll.u32 %s296_s19, 4 }
  0x1a   : > { %s1753_s13 = scalar_lea.vmem %s2703_s0, %s1509_s26  ;;  %v494_v18 = vld [vmem:[%s2706_s3 + $0x68] sm:$0xff]  ;;  %v310_v20 = vld [vmem:[%s2705_s2 + $0x20] sm:$0xff]  ;;  %v524_v24 = vld [vmem:[%s2706_s3 + $0x158] sm:$0xff]  ;;  %s1639_s26 = smov 127  }
  0x1b   : > { %335 = vperm.xlu1 %1569, %v315_v3   ;;  %325 = vperm.xlu0 %1568, %v313_v4   ;;  %v305_v6 = vld [vmem:[%s1753_s13 + $0x8] sm:$0xff]  ;;  %v304_v7 = vld [vmem:[%s1753_s13] sm:$0xff]  ;;  %v523_v25 = vld [vmem:[%s2706_s3 + $0x150] sm:$0xff]  ;;  %s1510_s21 = sshll.u32 %s1709_s9, 8  ;;  %s298_s22 = scalar_lea.vmem [#allocation2], %s1494_s20 }
  0x1c   : > { %367 = vmatprep.subr.mxu0 %v305_v6  ;;  %v518_v21 = vld [vmem:[%s2706_s3 + $0x128] sm:$0xff]  ;;  %v517_v22 = vld [vmem:[%s2706_s3 + $0x120] sm:$0xff]  ;;  %v484_v26 = vld [vmem:[%s2706_s3 + $0x18] sm:$0xff]  ;;  %s1431_s23 = sshll.u32 %s298_s22, 4  ;;  %s1417_s10 = scalar_lea.sflag [#allocation3], %s296_s19  ;;  %s2663_s23 = int_to_ptr.vmem [resolvable:$true] %s1431_s23 }
  0x1d   : > { %368 = vmatpush1.msra.mxu0 %v304_v7  ;;  %v311_v23 = vld [vmem:[%s2705_s2 + $0x28] sm:$0xff]  ;;  %v483_v27 = vld [vmem:[%s2706_s3 + $0x10] sm:$0xff]  ;;  %v489_v29 = vld [vmem:[%s2706_s3 + $0x40] sm:$0xff]  ;;  %s1572_s9 = scalar_lea.vmem %s2663_s23, 256 }
  0x1e   : > { %1497 = vmatmul.mubr.msk.f32.vlgmr.msra.gmra.mrb[0].mxu0 %vm348_vm0, %v306_v8  ;;  %v490_v28 = vld [vmem:[%s2706_s3 + $0x48] sm:$0xff]  ;;  %v529_v31 = vld [vmem:[%s2706_s3 + $0x180] sm:$0xff]  ;;  %v496_v32 = vld [vmem:[%s2706_s3 + $0x78] sm:$0xff]  ;;  %p1573_p11 = scmp.ne.s32.totalorder %s2663_s23, %s1572_s9 }
  0x1f   : > { %345 = vperm.xlu1 %1569, %v317_v9   ;;  %340 = vperm.xlu0 %1568, %v316_v10   ;;  %v530_v30 = vld [vmem:[%s2706_s3 + $0x188] sm:$0xff]  ;;  %v495_v33 = vld [vmem:[%s2706_s3 + $0x70] sm:$0xff]  ;;  %v520_v34 = vld [vmem:[%s2706_s3 + $0x138] sm:$0xff] }
  0x20   : > { %437 = vmatprep.mubr.f32.mxu0 %v1637_v5  ;;  %v519_v35 = vld [vmem:[%s2706_s3 + $0x130] sm:$0xff]  ;;  %v526_v36 = vld [vmem:[%s2706_s3 + $0x168] sm:$0xff]  ;;  %v525_v37 = vld [vmem:[%s2706_s3 + $0x160] sm:$0xff]  ;;  %p1574_p12 = pnand %p1573_p11, %p1726_p5 }
  0x21   : > { %v486_v38 = vld [vmem:[%s2706_s3 + $0x28] sm:$0xff]  ;;  %v485_v39 = vld [vmem:[%s2706_s3 + $0x20] sm:$0xff]  ;;  %v492_v40 = vld [vmem:[%s2706_s3 + $0x58] sm:$0xff] }
  0x22   : > { %1498 = vmatmul.mubr.msk.f32.gmra.mrb[2].mxu0 %vm348_vm0, %v307_v11  ;;  %v491_v41 = vld [vmem:[%s2706_s3 + $0x50] sm:$0xff]  ;;  %v532_v42 = vld [vmem:[%s2706_s3 + $0x198] sm:$0xff]  ;;  %v498_v44 = vld [vmem:[%s2706_s3 + $0x88] sm:$0xff]  ;;  %p1575_p13 = pneg %p1574_p12 }
  0x23   : > { %679 = vperm.xlu1 %1569, %v482_v12   ;;  %674 = vperm.xlu0 %1568, %v481_v13   ;;  %v531_v43 = vld [vmem:[%s2706_s3 + $0x190] sm:$0xff]  ;;  %v497_v45 = vld [vmem:[%s2706_s3 + $0x80] sm:$0xff]  ;;  %v522_v46 = vld [vmem:[%s2706_s3 + $0x148] sm:$0xff] }
  0x24   : > { %443 = vmatprep.mubr.f32.mxu0 %v1637_v5  ;;  %v521_v47 = vld [vmem:[%s2706_s3 + $0x140] sm:$0xff]  ;;  %v528_v48 = vld [vmem:[%s2706_s3 + $0x178] sm:$0xff]  ;;  %v527_v49 = vld [vmem:[%s2706_s3 + $0x170] sm:$0xff] }
  0x25   : > { %v534_v50 = vld [vmem:[%s2706_s3 + $0x1a8] sm:$0xff]  ;;  %v533_v51 = vld [vmem:[%s2706_s3 + $0x1a0] sm:$0xff]  ;;  %v500_v52 = vld [vmem:[%s2706_s3 + $0x98] sm:$0xff] }
  0x26   : > { %1499 = vmatmul.mubr.msk.f32.gmra.mrb[4].mxu0 %vm348_vm0, %v308_v14  ;;  %v499_v53 = vld [vmem:[%s2706_s3 + $0x90] sm:$0xff]  ;;  %v506_v54 = vld [vmem:[%s2706_s3 + $0xc8] sm:$0xff]  ;;  %v505_v55 = vld [vmem:[%s2706_s3 + $0xc0] sm:$0xff] }
  0x27   : > { %721 = vperm.xlu1 %1569, %v488_v15   ;;  %716 = vperm.xlu0 %1568, %v487_v16   ;;  %v512_v56 = vld [vmem:[%s2706_s3 + $0xf8] sm:$0xff]  ;;  %v511_v57 = vld [vmem:[%s2706_s3 + $0xf0] sm:$0xff]  ;;  %v502_v58 = vld [vmem:[%s2706_s3 + $0xa8] sm:$0xff] }
  0x28   : > { %449 = vmatprep.mubr.f32.mxu0 %v1637_v5  ;;  %v501_v59 = vld [vmem:[%s2706_s3 + $0xa0] sm:$0xff]  ;;  %v508_v60 = vld [vmem:[%s2706_s3 + $0xd8] sm:$0xff]  ;;  %v507_v61 = vld [vmem:[%s2706_s3 + $0xd0] sm:$0xff] }
  0x29   : > { %v514_v62 = vld [vmem:[%s2706_s3 + $0x108] sm:$0xff]  ;;  %v513_v63 = vld [vmem:[%s2706_s3 + $0x100] sm:$0xff] }
  0x2a   : > { %1500 = vmatmul.mubr.msk.f32.gmra.mrb[6].mxu0 %vm348_vm0, %v309_v17  ;;  %v1123_v0 = vld [vmem:[%s2709_s6 + $0x8] sm:$0xff]  ;;  %v1122_v1 = vld [vmem:[%s2709_s6] sm:$0xff] }
  0x2b   : > { %775 = vperm.xlu1 %1569, %v494_v18   ;;  %770 = vperm.xlu0 %1568, %v493_v19  }
  0x2c   : > { %455 = vmatprep.mubr.f32.mxu0 %v1637_v5 }
  0x2e   : > { %1501 = vmatmul.mubr.msk.f32.gmra.mrb[8].mxu0 %vm348_vm0, %v310_v20 }
  0x2f   : > { %979 = vperm.xlu1 %1569, %v518_v21   ;;  %974 = vperm.xlu0 %1568, %v517_v22  }
  0x30   : > { %461 = vmatprep.mubr.f32.mxu0 %v1637_v5 }
  0x32   : > { %1502 = vmatmul.mubr.msk.f32.gmra.mrb[10].mxu0 %vm348_vm0, %v311_v23 }
  0x33   : > { %1021 = vperm.xlu1 %1569, %v524_v24   ;;  %1016 = vperm.xlu0 %1568, %v523_v25  }
  0x37   : > { %689 = vperm.xlu1 %1569, %v484_v26   ;;  %684 = vperm.xlu0 %1568, %v483_v27  }
  0x3b   : > { %731 = vperm.xlu1 %1569, %v490_v28   ;;  %726 = vperm.xlu0 %1568, %v489_v29  }
  0x3f   : > { %1075 = vperm.xlu1 %1569, %v530_v30   ;;  %1070 = vperm.xlu0 %1568, %v529_v31  }
  0x43   : > { %785 = vperm.xlu1 %1569, %v496_v32   ;;  %780 = vperm.xlu0 %1568, %v495_v33  }
  0x47   : > { %989 = vperm.xlu1 %1569, %v520_v34   ;;  %984 = vperm.xlu0 %1568, %v519_v35  }
  0x4b   : > { %1031 = vperm.xlu1 %1569, %v526_v36   ;;  %1026 = vperm.xlu0 %1568, %v525_v37  }
  0x4f   : > { %699 = vperm.xlu1 %1569, %v486_v38   ;;  %694 = vperm.xlu0 %1568, %v485_v39  }
  0x53   : > { %741 = vperm.xlu1 %1569, %v492_v40   ;;  %736 = vperm.xlu0 %1568, %v491_v41  }
  0x57   : > { %1085 = vperm.xlu1 %1569, %v532_v42   ;;  %1080 = vperm.xlu0 %1568, %v531_v43  }
  0x5b   : > { %795 = vperm.xlu1 %1569, %v498_v44   ;;  %790 = vperm.xlu0 %1568, %v497_v45  }
  0x5f   : > { %999 = vperm.xlu1 %1569, %v522_v46   ;;  %994 = vperm.xlu0 %1568, %v521_v47  }
  0x63   : > { %1041 = vperm.xlu1 %1569, %v528_v48   ;;  %1036 = vperm.xlu0 %1568, %v527_v49  }
  0x67   : > { %1095 = vperm.xlu1 %1569, %v534_v50   ;;  %1090 = vperm.xlu0 %1568, %v533_v51  }
  0x6b   : > { %829 = vperm.xlu1 %1569, %v500_v52   ;;  %824 = vperm.xlu0 %1568, %v499_v53  }
  0x6f   : > { %871 = vperm.xlu1 %1569, %v506_v54   ;;  %866 = vperm.xlu0 %1568, %v505_v55  }
  0x73   : > { %925 = vperm.xlu1 %1569, %v512_v56   ;;  %920 = vperm.xlu0 %1568, %v511_v57  }
  0x77   : > { %839 = vperm.xlu1 %1569, %v502_v58   ;;  %834 = vperm.xlu0 %1568, %v501_v59  }
  0x7b   : > { %881 = vperm.xlu1 %1569, %v508_v60   ;;  %876 = vperm.xlu0 %1568, %v507_v61  }
  0x7f   : > { %935 = vperm.xlu1 %1569, %v514_v62   ;;  %930 = vperm.xlu0 %1568, %v513_v63  }
  0x83   : > { %1135 = vperm.xlu1 %1569, %v1123_v0   ;;  %1130 = vperm.xlu0 %1568, %v1122_v1  }
  0x96   : > { %v1937_v2 = vpop.permute.xlu1 %330  ;;  %v321_v3 = vpop.permute.xlu0 %320 }
  0x9a   : > { %v1939_v4 = vpop.permute.xlu1 %335  ;;  %v326_v5 = vpop.permute.xlu0 %325 }
  0x9e   : > { %v1941_v6 = vpop.permute.xlu1 %345  ;;  %v1943_v7 = vpop.permute.xlu0 %340 }
  0xa2   : > { %v1945_v8 = vpop.permute.xlu1 %679  ;;  %v1947_v9 = vpop.permute.xlu0 %674 }
  0xa6   : > { %v1949_v10 = vpop.permute.xlu1 %721  ;;  %v1951_v11 = vpop.permute.xlu0 %716 }
  0xaa   : > { %v1953_v12 = vpop.permute.xlu1 %775  ;;  %v1955_v13 = vpop.permute.xlu0 %770 }
  0xae   : > { %v1957_v14 = vpop.permute.xlu1 %979  ;;  %v1959_v15 = vpop.permute.xlu0 %974 }
  0xb2   : > { %v1961_v16 = vpop.permute.xlu1 %1021  ;;  %v1963_v17 = vpop.permute.xlu0 %1016 }
  0xb6   : > { %v1965_v18 = vpop.permute.xlu1 %689  ;;  %v1967_v19 = vpop.permute.xlu0 %684 }
  0xba   : > { %v1969_v20 = vpop.permute.xlu1 %731  ;;  %v1971_v21 = vpop.permute.xlu0 %726 }
  0xbe   : > { %v1973_v22 = vpop.permute.xlu1 %1075  ;;  %v1975_v23 = vpop.permute.xlu0 %1070 }
  0xc2   : > { %v1977_v24 = vpop.permute.xlu1 %785  ;;  %v1979_v25 = vpop.permute.xlu0 %780 }
  0xc3   : > { %2744 = vst [vmem:[#allocation5_spill] sm:$0xff] %v1977_v24 }
  0xc6   : > { %v1981_v26 = vpop.permute.xlu1 %989  ;;  %v1983_v27 = vpop.permute.xlu0 %984 }
  0xc7   : > { %2745 = vst [vmem:[#allocation6_spill] sm:$0xff] %v1981_v26 }
  0xca   : > { %v1985_v28 = vpop.permute.xlu1 %1031  ;;  %v1027_v29 = vpop.permute.xlu0 %1026 }
  0xce   : > { %v1987_v30 = vpop.permute.xlu1 %699  ;;  %v1989_v31 = vpop.permute.xlu0 %694 }
  0xcf   : > { %2746 = vst [vmem:[#allocation7_spill] sm:$0xff] %v1987_v30  ;;  %2747 = vst [vmem:[#allocation8_spill] sm:$0xff] %v1989_v31 }
  0xd2   : > { %v1991_v32 = vpop.permute.xlu1 %741  ;;  %v1993_v33 = vpop.permute.xlu0 %736 }
  0xd3   : > { %2748 = vst [vmem:[#allocation9_spill] sm:$0xff] %v1991_v32 }
  0xd6   : > { %v1995_v34 = vpop.permute.xlu1 %1085  ;;  %v1997_v35 = vpop.permute.xlu0 %1080 }
  0xd7   : > { %2749 = vst [vmem:[#allocation10_spill] sm:$0xff] %v1995_v34  ;;  %2750 = vst [vmem:[#allocation11_spill] sm:$0xff] %v1997_v35 }
  0xda   : > { %v1999_v36 = vpop.permute.xlu1 %795  ;;  %v2001_v37 = vpop.permute.xlu0 %790 }
  0xdb   : > { %2751 = vst [vmem:[#allocation12_spill] sm:$0xff] %v1999_v36  ;;  %2752 = vst [vmem:[#allocation13_spill] sm:$0xff] %v2001_v37 }
  0xde   : > { %v2003_v38 = vpop.permute.xlu1 %999  ;;  %v2005_v39 = vpop.permute.xlu0 %994 }
  0xdf   : > { %2753 = vst [vmem:[#allocation14_spill] sm:$0xff] %v2003_v38  ;;  %2754 = vst [vmem:[#allocation15_spill] sm:$0xff] %v2005_v39 }
  0xe2   : > { %v2007_v40 = vpop.permute.xlu1 %1041  ;;  %v2009_v41 = vpop.permute.xlu0 %1036 }
  0xe3   : > { %2755 = vst [vmem:[#allocation16_spill] sm:$0xff] %v2007_v40  ;;  %2756 = vst [vmem:[#allocation17_spill] sm:$0xff] %v2009_v41 }
  0xe6   : > { %v2011_v42 = vpop.permute.xlu1 %1095  ;;  %v2013_v43 = vpop.permute.xlu0 %1090 }
  0xe7   : > { %2757 = vst [vmem:[#allocation18_spill] sm:$0xff] %v2011_v42  ;;  %2758 = vst [vmem:[#allocation19_spill] sm:$0xff] %v2013_v43 }
  0xea   : > { %v2015_v44 = vpop.permute.xlu1 %829  ;;  %v2017_v45 = vpop.permute.xlu0 %824 }
  0xee   : > { %v867_v46 = vpop.permute.xlu0 %866  ;;  %v872_v47 = vpop.permute.xlu1 %871 }
  0xf1   : > { %v433_v48 = vpop.f32.mrb[0].mxu0 }
  0xf2   : > { %v434_v49 = vadd.f32 %v433_v48, %v321_v3  ;;  %v2019_v50 = vpop.permute.xlu0 %920  ;;  %v435_v51 = vpop.f32.mrb[1].mxu0 }
  0xf3   : > { %v436_v53 = vadd.f32 %v435_v51, %v321_v3  ;;  %v2023_v55 = vpop.permute.xlu1 %925 }
  0xf4   : > { %v2021_v52 = vmax.f32 %v434_v49, 0.0 }
  0xf5   : > { %v439_v54 = vpop.f32.mrb[2].mxu0  ;;  %v2025_v56 = vmax.f32 %v436_v53, 0.0 }
  0xf6   : > { %v440_v57 = vadd.f32 %v439_v54, %v326_v5  ;;  %535 = vrot.lane.b32.xlu0 %v2021_v52, %s1638_s25  ;;  %v2030_v58 = vmul.f32 %v867_v46, %v2021_v52  ;;  %v2032_v59 = vpop.permute.xlu0 %834  ;;  %v441_v60 = vpop.f32.mrb[3].mxu0 }
  0xf7   : > { %v442_v62 = vadd.f32 %v441_v60, %v326_v5  ;;  %v2037_v63 = vmul.f32 %v867_v46, %v2025_v56  ;;  %v2049_v5 = vpop.permute.xlu1 %839 }
  0xf8   : > { %v2034_v61 = vmax.f32 %v440_v57, 0.0  ;;  %2759 = vst [vmem:[#allocation20_spill] sm:$0xff] %v2049_v5 }
  0xf9   : > { %v445_v0 = vpop.f32.mrb[4].mxu0  ;;  %v2039_v1 = vmax.f32 %v442_v62, 0.0 }
  0xfa   : > { %v446_v3 = vadd.f32 %v445_v0, %v1937_v2  ;;  %537 = vrot.lane.b32.xlu1 %v2034_v61, %s1638_s25  ;;  %605 = vrot.lane.b32.xlu0 %v2021_v52, %s1639_s26  ;;  %v2047_v48 = vmul.f32 %v872_v47, %v2034_v61  ;;  %v447_v49 = vpop.f32.mrb[5].mxu0  ;;  %v877_v54 = vpop.permute.xlu0 %876 }
  0xfb   : > { %v448_v51 = vadd.f32 %v447_v49, %v1937_v2  ;;  %v2055_v53 = vmul.f32 %v872_v47, %v2039_v1  ;;  %v882_v40 = vpop.permute.xlu1 %881  ;;  %v747_v5 = vmul.f32 %v1949_v10, %v2039_v1 }
  0xfc   : > { %v2051_v46 = vmax.f32 %v446_v3, 0.0 }
  0xfd   : > { %v451_v57 = vpop.f32.mrb[6].mxu0  ;;  %v2060_v62 = vmax.f32 %v448_v51, 0.0 }
  0xfe   : > { %v2058_v60 = vmul.f32 %v877_v54, %v2051_v46  ;;  %v452_v0 = vadd.f32 %v451_v57, %v1939_v4  ;;  %607 = vrot.lane.b32.xlu1 %v2034_v61, %s1639_s26  ;;  %547 = vrot.lane.b32.xlu0 %v2025_v56, %s1638_s25  ;;  %v453_v3 = vpop.f32.mrb[7].mxu0  ;;  %v2068_v2 = vmul.f32 %v1027_v29, %v2051_v46 }
  0xff   : > { %v454_v49 = vadd.f32 %v453_v3, %v1939_v4  ;;  %v2074_v42 = vmul.f32 %v1027_v29, %v2060_v62  ;;  %v2077_v57 = vmul.f32 %v877_v54, %v2060_v62 }
 0x100   : > { %2760 = vst [vmem:[#allocation21_spill] sm:$0xff] %v2068_v2  ;;  %v2070_v47 = vmax.f32 %v452_v0, 0.0 }
 0x101   : > { %2761 = vst [vmem:[#allocation22_spill] sm:$0xff] %v2074_v42  ;;  %v457_v51 = vpop.f32.mrb[8].mxu0  ;;  %v2079_v38 = vmax.f32 %v454_v49, 0.0 }
 0x102   : > { %549 = vrot.lane.b32.xlu1 %v2039_v1, %s1638_s25  ;;  %617 = vrot.lane.b32.xlu0 %v2025_v56, %s1639_s26  ;;  %v2087_v0 = vmul.f32 %v1985_v28, %v2070_v47  ;;  %v459_v4 = vpop.f32.mrb[9].mxu0  ;;  %v2090_v29 = vmul.f32 %v882_v40, %v2070_v47 }
 0x103   : > { %v2094_v54 = vmul.f32 %v1985_v28, %v2079_v38  ;;  %v2097_v49 = vmul.f32 %v882_v40, %v2079_v38  ;;  %v458_v28 = vadd.f32 %v457_v51, %v1943_v7  ;;  %v460_v39 = vadd.f32 %v459_v4, %v1943_v7  ;;  %v503_v7 = vld [vmem:[%s2706_s3 + $0xb0] sm:$0xff]  ;;  %v516_v4 = vld [vmem:[%s2706_s3 + $0x118] sm:$0xff] }
 0x104   : > { %2762 = vst [vmem:[#allocation23_spill] sm:$0xff] %v2087_v0  ;;  %2763 = vst [vmem:[#allocation24_spill] sm:$0xff] %v2090_v29 }
 0x105   : > { %2764 = vst [vmem:[#allocation25_spill] sm:$0xff] %v2094_v54  ;;  %v463_v3 = vpop.f32.mrb[10].mxu0  ;;  %2765 = vst [vmem:[#allocation26_spill] sm:$0xff] %v2097_v49  ;;  %v2116_v40 = vmax.f32 %v458_v28, 0.0  ;;  %v2130_v51 = vmax.f32 %v460_v39, 0.0  ;;  %v509_v39 = vld [vmem:[%s2706_s3 + $0xe0] sm:$0xff] }
 0x106   : > { %v465_v43 = vpop.f32.mrb[11].mxu0  ;;  %619 = vrot.lane.b32.xlu1 %v2039_v1, %s1639_s26  ;;  %539 = vrot.lane.b32.xlu0 %v2051_v46, %s1638_s25  ;;  %v464_v41 = vadd.f32 %v463_v3, %v1941_v6 }
 0x107   : > { %2767 = vst [vmem:[#allocation28_spill] sm:$0xff] %v2130_v51  ;;  %v466_v3 = vadd.f32 %v465_v43, %v1941_v6  ;;  %v504_v6 = vld [vmem:[%s2706_s3 + $0xb8] sm:$0xff]  ;;  %v515_v43 = vld [vmem:[%s2706_s3 + $0x110] sm:$0xff] }
 0x108   : > { %v2124_v36 = vmax.f32 %v464_v41, 0.0  ;;  %v510_v41 = vld [vmem:[%s2706_s3 + $0xe8] sm:$0xff] }
 0x109   : > { %v2137_v28 = vmax.f32 %v466_v3, 0.0  ;;  %v1124_v3 = vld [vmem:[%s2709_s6 + $0x10] sm:$0xff] }
 0x10a   : > { %541 = vrot.lane.b32.xlu1 %v2070_v47, %s1638_s25  ;;  %609 = vrot.lane.b32.xlu0 %v2051_v46, %s1639_s26  ;;  %2766 = vst [vmem:[#allocation27_spill] sm:$0xff] %v2124_v36 }
 0x10b   : > { %2768 = vst [vmem:[#allocation29_spill] sm:$0xff] %v2137_v28 }
 0x10e   : > { %611 = vrot.lane.b32.xlu1 %v2070_v47, %s1639_s26  ;;  %551 = vrot.lane.b32.xlu0 %v2060_v62, %s1638_s25 }
 0x112   : > { %553 = vrot.lane.b32.xlu1 %v2079_v38, %s1638_s25  ;;  %621 = vrot.lane.b32.xlu0 %v2060_v62, %s1639_s26 }
 0x116   : > { %623 = vrot.lane.b32.xlu1 %v2079_v38, %s1639_s26  ;;  %543 = vrot.lane.b32.xlu0 %v2116_v40, %s1638_s25 }
 0x11a   : > { %545 = vrot.lane.b32.xlu1 %v2124_v36, %s1638_s25  ;;  %613 = vrot.lane.b32.xlu0 %v2116_v40, %s1639_s26 }
 0x11e   : > { %615 = vrot.lane.b32.xlu1 %v2124_v36, %s1639_s26  ;;  %555 = vrot.lane.b32.xlu0 %v2130_v51, %s1638_s25 }
 0x122   : > { %557 = vrot.lane.b32.xlu1 %v2137_v28, %s1638_s25  ;;  %625 = vrot.lane.b32.xlu0 %v2130_v51, %s1639_s26  ;;  %s1640_s25 = smov 16  }
 0x126   : > { %627 = vrot.lane.b32.xlu1 %v2137_v28, %s1639_s26  ;;  %844 = vperm.xlu0 %1568, %v503_v7   ;;  %v1125_v7 = vld [vmem:[%s2709_s6 + $0x18] sm:$0xff]  ;;  %s1641_s26 = smov 112  }
 0x12a   : > { %849 = vperm.xlu1 %1569, %v504_v6   ;;  %886 = vperm.xlu0 %1568, %v509_v39   ;;  %v1126_v6 = vld [vmem:[%s2709_s6 + $0x20] sm:$0xff]  ;;  %v1127_v39 = vld [vmem:[%s2709_s6 + $0x28] sm:$0xff] }
 0x12e   : > { %891 = vperm.xlu1 %1569, %v510_v41   ;;  %940 = vperm.xlu0 %1568, %v515_v43   ;;  %v2175_v41 = vpop.permute.xlu0 %930  ;;  %v559_v43 = vlaneseq }
 0x12f   : > { %2769 = vst [vmem:[#allocation30_spill] sm:$0xff] %v2175_v41 }
 0x130   : > { %v2192_v36 = vand.u32 127, %v559_v43 }
 0x132   : > { %945 = vperm.xlu1 %1569, %v516_v4   ;;  %1140 = vperm.xlu0 %1568, %v1124_v3   ;;  %v2177_v4 = vpop.permute.xlu1 %935  ;;  %v2179_v3 = vshrl.u32 %v559_v43, 7  ;;  %v2181_v28 = vpop.permute.xlu0 %1130  ;;  %vm561_vm1 = vcmp.lt.s32.totalorder %v2192_v36, 1  ;;  %vm629_vm2 = vcmp.lt.s32.totalorder %v2192_v36, 127  ;;  %vm1194_vm3 = vcmp.lt.s32.totalorder %v2192_v36, 16 }
 0x133   : > { %2770 = vst [vmem:[#allocation31_spill] sm:$0xff] %v2177_v4  ;;  %2772 = vst [vmem:[#allocation33_spill] sm:$0xff] %v2181_v28  ;;  %vm1273_vm4 = vcmp.lt.s32.totalorder %v2192_v36, 112  ;;  %v1328_v36 = vld [vmem:[%s2707_s4] sm:$0xff] }
 0x134   : > { %2771 = vst [vmem:[#allocation32_spill] sm:$0xff] %v2179_v3  ;;  %v577_v51 = vsub.s32 0, %v2179_v3  ;;  %v581_v32 = vsub.s32 4, %v2179_v3  ;;  %v644_v4 = vsub.s32 1, %v2179_v3  ;;  %v648_v28 = vsub.s32 5, %v2179_v3 }
 0x136   : > { %1145 = vperm.xlu1 %1569, %v1125_v7   ;;  %1150 = vperm.xlu0 %1568, %v1126_v6   ;;  %v2188_v7 = vld [vmem:[%s2704_s1] sm:$0xff]  ;;  %v2190_v6 = vpop.permute.xlu1 %1135 }
 0x137   : > { %2773 = vst [vmem:[#allocation34_spill] sm:$0xff] %v2188_v7  ;;  %2774 = vst [vmem:[#allocation35_spill] sm:$0xff] %v2190_v6  ;;  %v578_v30 = vrot.slane %v2188_v7, %v577_v51  ;;  %v582_v37 = vrot.slane %v2188_v7, %v581_v32  ;;  %v645_v49 = vrot.slane %v2188_v7, %v644_v4 }
 0x138   : > { %v649_v29 = vrot.slane %v2188_v7, %v648_v28 }
 0x139   : > { %v2199_v0 = vrot.slane %v578_v30, %v577_v51  ;;  %v2201_v42 = vrot.slane %v582_v37, %v577_v51 }
 0x13a   : > { %1155 = vperm.xlu1 %1569, %v1127_v39   ;;  %v2220_v28 = vrot.slane %v649_v29, %v644_v4 }
 0x168   : > { %v536_v39 = vpop.permute.xlu0 %535 }
 0x16c   : > { %v538_v54 = vpop.permute.xlu1 %537  ;;  %v606_v31 = vpop.permute.xlu0 %605 }
 0x170   : > { %v608_v6 = vpop.permute.xlu1 %607  ;;  %v548_v2 = vpop.permute.xlu0 %547 }
 0x171   : > { %v562_v43 = vsel %vm561_vm1, %v536_v39, %v548_v2  ;;  %v568_v32 = vsel %vm561_vm1, %v548_v2, %v536_v39  ;;  %v2218_v39 = vrot.slane %v645_v49, %v644_v4 }
 0x172   : > { %v593_v3 = vmul.f32 %v2199_v0, %v568_v32  ;;  %v594_v34 = vmul.f32 %v2201_v42, %v562_v43 }
 0x174   : > { %v852_v30 = vmul.f32 %v2017_v45, %v593_v3  ;;  %v853_v37 = vmul.f32 %v2017_v45, %v594_v34  ;;  %v550_v51 = vpop.permute.xlu1 %549  ;;  %v618_v35 = vpop.permute.xlu0 %617  ;;  %v702_v29 = vmul.f32 %v1947_v9, %v593_v3 }
 0x175   : > { %v563_v41 = vsel %vm561_vm1, %v538_v54, %v550_v51  ;;  %v569_v2 = vsel %vm561_vm1, %v550_v51, %v538_v54  ;;  %v630_v26 = vsel %vm629_vm2, %v606_v31, %v618_v35  ;;  %v636_v24 = vsel %vm629_vm2, %v618_v35, %v606_v31 }
 0x176   : > { %v906_v43 = vadd.f32 %v2030_v58, %v852_v30  ;;  %v2224_v32 = vadd.f32 %v2037_v63, %v853_v37  ;;  %v595_v45 = vmul.f32 %v2199_v0, %v569_v2  ;;  %v596_v7 = vmul.f32 %v2201_v42, %v563_v41 }
 0x177   : > { %v744_v54 = vmul.f32 %v1951_v11, %v2021_v52  ;;  %v1044_v41 = vmul.f32 %v1963_v17, %v2021_v52  ;;  %v660_v37 = vmul.f32 %v2218_v39, %v630_v26  ;;  %v2242_v31 = vmul.f32 %v2220_v28, %v636_v24 }
 0x178   : > { %2775 = vst [vmem:[#allocation36_spill] sm:$0xff] %v2224_v32  ;;  %v854_v58 = vmul.f32 %v2015_v44, %v595_v45  ;;  %v855_v63 = vmul.f32 %v2015_v44, %v596_v7  ;;  %v620_v49 = vpop.permute.xlu1 %619  ;;  %v540_v4 = vpop.permute.xlu0 %539  ;;  %v704_v30 = vmul.f32 %v1945_v8, %v595_v45  ;;  %v745_v35 = vmul.f32 %v1951_v11, %v2025_v56 }
 0x179   : > { %v631_v44 = vsel %vm629_vm2, %v608_v6, %v620_v49  ;;  %v637_v52 = vsel %vm629_vm2, %v620_v49, %v608_v6  ;;  %v746_v24 = vmul.f32 %v1949_v10, %v2034_v61  ;;  %v1045_v11 = vmul.f32 %v1963_v17, %v2025_v56 }
 0x17a   : > { %v908_v51 = vadd.f32 %v2047_v48, %v854_v58  ;;  %v2248_v2 = vadd.f32 %v2055_v53, %v855_v63  ;;  %v662_v32 = vmul.f32 %v2218_v39, %v631_v44  ;;  %v2256_v26 = vmul.f32 %v2220_v28, %v637_v52 }
 0x17b   : > { %v703_v48 = vmul.f32 %v1947_v9, %v594_v34  ;;  %v756_v63 = vadd.f32 %v744_v54, %v702_v29  ;;  %v1046_v6 = vmul.f32 %v1961_v16, %v2034_v61  ;;  %v705_v49 = vmul.f32 %v1945_v8, %v596_v7 }
 0x17c   : > { %2776 = vst [vmem:[#allocation37_spill] sm:$0xff] %v2248_v2  ;;  %v542_v53 = vpop.permute.xlu1 %541  ;;  %v610_v58 = vpop.permute.xlu0 %609  ;;  %v798_v2 = vmul.f32 %v1955_v13, %v660_v37  ;;  %v758_v44 = vadd.f32 %v746_v24, %v704_v30  ;;  %v800_v52 = vmul.f32 %v1953_v12, %v662_v32  ;;  %v948_v17 = vmul.f32 %v2019_v50, %v660_v37 }
 0x17d   : > { %v799_v9 = vmul.f32 %v1955_v13, %v2242_v31  ;;  %v1047_v54 = vmul.f32 %v1961_v16, %v2039_v1  ;;  %v950_v29 = vmul.f32 %v2023_v55, %v662_v32  ;;  %v748_v8 = vmul.f32 %v1971_v21, %v2051_v46 }
 0x17e   : > { %v810_v56 = vadd.f32 %v798_v2, %v756_v63  ;;  %v812_v61 = vadd.f32 %v800_v52, %v758_v44  ;;  %v801_v30 = vmul.f32 %v1953_v12, %v2256_v26  ;;  %v1002_v10 = vmul.f32 %v1959_v15, %v593_v3 }
 0x17f   : > { %v2284_v13 = vmul.f32 %v1971_v21, %v2060_v62  ;;  %v757_v1 = vadd.f32 %v745_v35, %v703_v48  ;;  %v2288_v24 = vmul.f32 %v1969_v20, %v2070_v47  ;;  %v1003_v46 = vmul.f32 %v1959_v15, %v594_v34 }
 0x180   : > { %1170 = vrot.lane.b32.xlu0 %v810_v56, %s1640_s25  ;;  %v612_v2 = vpop.permute.xlu1 %611  ;;  %v552_v16 = vpop.permute.xlu0 %551  ;;  %v1004_v12 = vmul.f32 %v1957_v14, %v595_v45  ;;  %1172 = vrot.lane.b32.xlu1 %v812_v61, %s1640_s25  ;;  %v759_v63 = vadd.f32 %v747_v5, %v705_v49  ;;  %v1098_v35 = vmul.f32 %v1975_v23, %v660_v37 }
 0x181   : > { %v570_v3 = vsel %vm561_vm1, %v552_v16, %v540_v4  ;;  %v564_v21 = vsel %vm561_vm1, %v540_v4, %v552_v16  ;;  %v811_v62 = vadd.f32 %v799_v9, %v757_v1  ;;  %v2298_v48 = vadd.f32 %v948_v17, %v906_v43 }
 0x182   : > { %v597_v47 = vmul.f32 %v2199_v0, %v570_v3  ;;  %v813_v44 = vadd.f32 %v801_v30, %v759_v63  ;;  %v1100_v15 = vmul.f32 %v1973_v22, %v662_v32  ;;  %v2302_v34 = vadd.f32 %v950_v29, %v908_v51 }
 0x183   : > { %v1005_v45 = vmul.f32 %v1957_v14, %v596_v7  ;;  %v751_v5 = vmul.f32 %v1969_v20, %v2079_v38  ;;  %v1056_v52 = vadd.f32 %v1044_v41, %v1002_v10  ;;  %v1099_v43 = vmul.f32 %v1975_v23, %v2242_v31 }
 0x184   : > { %1182 = vrot.lane.b32.xlu0 %v811_v62, %s1640_s25  ;;  %v554_v4 = vpop.permute.xlu1 %553  ;;  %v622_v49 = vpop.permute.xlu0 %621  ;;  %v598_v37 = vmul.f32 %v2201_v42, %v564_v21  ;;  %1184 = vrot.lane.b32.xlu1 %v813_v44, %s1640_s25  ;;  %v1058_v14 = vadd.f32 %v1046_v6, %v1004_v12  ;;  %v1057_v38 = vadd.f32 %v1045_v11, %v1003_v46 }
 0x185   : > { %v565_v32 = vsel %vm561_vm1, %v542_v53, %v554_v4  ;;  %v571_v51 = vsel %vm561_vm1, %v554_v4, %v542_v53  ;;  %v1110_v20 = vadd.f32 %v1098_v35, %v1056_v52  ;;  %v1101_v41 = vmul.f32 %v1973_v22, %v2256_v26 }
 0x186   : > { %v599_v7 = vmul.f32 %v2199_v0, %v571_v51  ;;  %v706_v23 = vmul.f32 %v1967_v19, %v597_v47  ;;  %v632_v17 = vsel %vm629_vm2, %v610_v58, %v622_v49  ;;  %v638_v56 = vsel %vm629_vm2, %v622_v49, %v610_v58  ;;  %v2779_v51 = vld [vmem:[#allocation6_spill] sm:$0xff] }
 0x187   : > { %v1112_v9 = vadd.f32 %v1100_v15, %v1058_v14  ;;  %v2325_v53 = vmul.f32 %v2201_v42, %v565_v32  ;;  %v1111_v29 = vadd.f32 %v1099_v43, %v1057_v38  ;;  %v1059_v61 = vadd.f32 %v1047_v54, %v1005_v45  ;;  %v2778_v43 = vld [vmem:[#allocation5_spill] sm:$0xff]  ;;  %v2780_v14 = vld [vmem:[#allocation30_spill] sm:$0xff] }
 0x188   : > { %1249 = vrot.lane.b32.xlu0 %v1110_v20, %s1641_s26  ;;  %v624_v6 = vpop.permute.xlu1 %623  ;;  %v544_v11 = vpop.permute.xlu0 %543  ;;  %v2330_v22 = vmul.f32 %v1993_v33, %v2116_v40  ;;  %v856_v30 = vmul.f32 %v2032_v59, %v597_v47  ;;  %v857_v10 = vmul.f32 %v2032_v59, %v598_v37  ;;  %v664_v58 = vmul.f32 %v2218_v39, %v632_v17 }
 0x189   : > { %v665_v16 = vmul.f32 %v2220_v28, %v638_v56  ;;  %1251 = vrot.lane.b32.xlu1 %v1112_v9, %s1641_s26  ;;  %v708_v1 = vmul.f32 %v1965_v18, %v599_v7  ;;  %v633_v46 = vsel %vm629_vm2, %v612_v2, %v624_v6  ;;  %v639_v54 = vsel %vm629_vm2, %v624_v6, %v612_v2 }
 0x18a   : > { %v1113_v12 = vadd.f32 %v1101_v41, %v1059_v61  ;;  %v707_v3 = vmul.f32 %v1967_v19, %v598_v37  ;;  %v760_v63 = vadd.f32 %v748_v8, %v706_v23  ;;  %v1006_v59 = vmul.f32 %v1983_v27, %v597_v47  ;;  %v2781_v41 = vld [vmem:[#allocation11_spill] sm:$0xff] }
 0x18b   : > { %v802_v21 = vmul.f32 %v1979_v25, %v664_v58  ;;  %v1007_v62 = vmul.f32 %v1983_v27, %v598_v37  ;;  %v709_v35 = vmul.f32 %v1965_v18, %v2325_v53  ;;  %v666_v44 = vmul.f32 %v2218_v39, %v633_v46  ;;  %v2777_v18 = vld [vmem:[#allocation20_spill] sm:$0xff]  ;;  %v2785_v46 = vld [vmem:[#allocation21_spill] sm:$0xff] }
 0x18c   : > { %v667_v15 = vmul.f32 %v2220_v28, %v639_v54  ;;  %1261 = vrot.lane.b32.xlu0 %v1111_v29, %s1641_s26  ;;  %v546_v2 = vpop.permute.xlu1 %545  ;;  %v614_v45 = vpop.permute.xlu0 %613  ;;  %v803_v19 = vmul.f32 %v1979_v25, %v665_v16  ;;  %v910_v47 = vadd.f32 %v2058_v60, %v856_v30  ;;  %v911_v27 = vadd.f32 %v2077_v57, %v857_v10  ;;  %v2782_v29 = vld [vmem:[#allocation10_spill] sm:$0xff]  ;;  %v2783_v30 = vld [vmem:[#allocation24_spill] sm:$0xff] }
 0x18d   : > { %1263 = vrot.lane.b32.xlu1 %v1113_v12, %s1641_s26  ;;  %v814_v8 = vadd.f32 %v802_v21, %v760_v63  ;;  %v762_v4 = vadd.f32 %v2288_v24, %v708_v1  ;;  %v858_v49 = vmul.f32 %v2777_v18, %v599_v7  ;;  %v859_v52 = vmul.f32 %v2777_v18, %v2325_v53  ;;  %v2786_v12 = vld [vmem:[#allocation22_spill] sm:$0xff]  ;;  %v2787_v63 = vld [vmem:[#allocation23_spill] sm:$0xff] }
 0x18e   : > { %v804_v37 = vmul.f32 %v2778_v43, %v666_v44  ;;  %v761_v32 = vadd.f32 %v2284_v13, %v707_v3  ;;  %v1008_v25 = vmul.f32 %v2779_v51, %v599_v7  ;;  %v952_v20 = vmul.f32 %v2780_v14, %v664_v58  ;;  %v2789_v18 = vld [vmem:[#allocation31_spill] sm:$0xff] }
 0x18f   : > { %v953_v38 = vmul.f32 %v2780_v14, %v665_v16  ;;  %v763_v60 = vadd.f32 %v751_v5, %v709_v35  ;;  %v1102_v57 = vmul.f32 %v2781_v41, %v664_v58  ;;  %v805_v24 = vmul.f32 %v2778_v43, %v667_v15  ;;  %v2784_v58 = vld [vmem:[#allocation26_spill] sm:$0xff]  ;;  %v2788_v35 = vld [vmem:[#allocation33_spill] sm:$0xff] }
 0x190   : > { %1174 = vrot.lane.b32.xlu0 %v814_v8, %s1640_s25  ;;  %v616_v23 = vpop.permute.xlu1 %615  ;;  %v816_v17 = vadd.f32 %v804_v37, %v762_v4  ;;  %v556_v56 = vpop.permute.xlu0 %555  ;;  %v815_v13 = vadd.f32 %v803_v19, %v761_v32  ;;  %v2369_v6 = vadd.f32 %v952_v20, %v910_v47  ;;  %v1104_v61 = vmul.f32 %v2782_v29, %v666_v44  ;;  %v2790_v37 = vld [vmem:[#allocation8_spill] sm:$0xff] }
 0x191   : > { %v572_v9 = vsel %vm561_vm1, %v556_v56, %v544_v11  ;;  %v2371_v7 = vadd.f32 %v953_v38, %v911_v27  ;;  %v912_v10 = vadd.f32 %v2783_v30, %v858_v49  ;;  %v913_v1 = vadd.f32 %v2784_v58, %v859_v52 }
 0x192   : > { %1176 = vrot.lane.b32.xlu1 %v816_v17, %s1640_s25  ;;  %v2376_v5 = vmul.f32 %v2199_v0, %v572_v9  ;;  %v1060_v54 = vadd.f32 %v2785_v46, %v1006_v59  ;;  %v1061_v3 = vadd.f32 %v2786_v12, %v1007_v62  ;;  %v1062_v21 = vadd.f32 %v2787_v63, %v1008_v25 }
 0x193   : > { %v2385_v19 = vadd.f32 %v2788_v35, %v2298_v48  ;;  %v566_v8 = vsel %vm561_vm1, %v544_v11, %v556_v56  ;;  %v817_v27 = vadd.f32 %v805_v24, %v763_v60  ;;  %v954_v49 = vmul.f32 %v2789_v18, %v666_v44  ;;  %v2791_v60 = vld [vmem:[#allocation35_spill] sm:$0xff]  ;;  %v2793_v56 = vld [vmem:[#allocation13_spill] sm:$0xff] }
 0x194   : > { %1186 = vrot.lane.b32.xlu0 %v815_v13, %s1640_s25  ;;  %v558_v47 = vpop.permute.xlu1 %557  ;;  %v626_v4 = vpop.permute.xlu0 %625  ;;  %v955_v59 = vmul.f32 %v2789_v18, %v667_v15  ;;  %v1009_v62 = vmul.f32 %v2779_v51, %v2325_v53  ;;  %v1103_v52 = vmul.f32 %v2781_v41, %v665_v16  ;;  %v1105_v43 = vmul.f32 %v2782_v29, %v667_v15 }
 0x195   : > { %v573_v48 = vsel %vm561_vm1, %v558_v47, %v546_v2  ;;  %v634_v11 = vsel %vm629_vm2, %v614_v45, %v626_v4  ;;  %v710_v32 = vmul.f32 %v2790_v37, %v2376_v5  ;;  %v1114_v44 = vadd.f32 %v1102_v57, %v1060_v54  ;;  %v2797_v54 = vld [vmem:[#allocation28_spill] sm:$0xff] }
 0x196   : > { %1188 = vrot.lane.b32.xlu1 %v817_v27, %s1640_s25  ;;  %v1116_v25 = vadd.f32 %v1104_v61, %v1062_v21  ;;  %v2404_v14 = vmul.f32 %v2201_v42, %v566_v8  ;;  %v2407_v53 = vmul.f32 %v2199_v0, %v573_v48  ;;  %v640_v16 = vsel %vm629_vm2, %v626_v4, %v614_v45  ;;  %v2792_v45 = vld [vmem:[#allocation25_spill] sm:$0xff] }
 0x197   : > { %v2412_v51 = vmul.f32 %v2218_v39, %v634_v11  ;;  %v567_v15 = vsel %vm561_vm1, %v546_v2, %v558_v47  ;;  %v2417_v20 = vadd.f32 %v954_v49, %v912_v10  ;;  %v2419_v38 = vadd.f32 %v955_v59, %v913_v1  ;;  %v2802_v59 = vld [vmem:[#allocation29_spill] sm:$0xff] }
 0x198   : > { %1253 = vrot.lane.b32.xlu0 %v1114_v44, %s1641_s26  ;;  %v2423_v41 = vadd.f32 %v2791_v60, %v2302_v34  ;;  %v949_v0 = vmul.f32 %v2019_v50, %v2242_v31  ;;  %v1063_v57 = vadd.f32 %v2792_v45, %v1009_v62  ;;  %v628_v24 = vpop.permute.xlu1 %627  ;;  %v764_v17 = vadd.f32 %v2330_v22, %v710_v32  ;;  %v2794_v50 = vld [vmem:[#allocation7_spill] sm:$0xff]  ;;  %v2803_v11 = vld [vmem:[#allocation17_spill] sm:$0xff] }
 0x199   : > { %v2430_v2 = vmul.f32 %v2220_v28, %v640_v16  ;;  %v806_v9 = vmul.f32 %v2793_v56, %v2412_v51  ;;  %v1115_v13 = vadd.f32 %v1103_v52, %v1061_v3  ;;  %v951_v34 = vmul.f32 %v2023_v55, %v2256_v26  ;;  %v2795_v55 = vld [vmem:[#allocation27_spill] sm:$0xff]  ;;  %v2796_v26 = vld [vmem:[#allocation9_spill] sm:$0xff] }
 0x19a   : > { %1255 = vrot.lane.b32.xlu1 %v1116_v25, %s1641_s26  ;;  %v2438_v29 = vmul.f32 %v2201_v42, %v567_v15  ;;  %v712_v31 = vmul.f32 %v2794_v50, %v2407_v53  ;;  %v1117_v61 = vadd.f32 %v1105_v43, %v1063_v57  ;;  %v711_v22 = vmul.f32 %v2790_v37, %v2404_v14  ;;  %v2804_v37 = vld [vmem:[#allocation19_spill] sm:$0xff]  ;;  %v2806_v57 = vld [vmem:[#allocation16_spill] sm:$0xff] }
 0x19b   : > { %v635_v30 = vsel %vm629_vm2, %v616_v23, %v628_v24  ;;  %v641_v10 = vsel %vm629_vm2, %v628_v24, %v616_v23  ;;  %v818_v58 = vadd.f32 %v806_v9, %v764_v17  ;;  %v754_v42 = vmul.f32 %v2796_v26, %v2795_v55  ;;  %v2798_v23 = vld [vmem:[#allocation36_spill] sm:$0xff]  ;;  %v2807_v17 = vld [vmem:[#allocation18_spill] sm:$0xff] }
 0x19c   : > { %1265 = vrot.lane.b32.xlu0 %v1115_v13, %s1641_s26  ;;  %v2452_v1 = vmul.f32 %v2218_v39, %v635_v30  ;;  %v2455_v46 = vmul.f32 %v2220_v28, %v641_v10  ;;  %v753_v12 = vmul.f32 %v1993_v33, %v2797_v54  ;;  %v807_v3 = vmul.f32 %v2793_v56, %v2430_v2  ;;  %v2799_v39 = vld [vmem:[#allocation12_spill] sm:$0xff]  ;;  %v2800_v28 = vld [vmem:[#allocation15_spill] sm:$0xff]  ;;  %v2801_v33 = vld [vmem:[#allocation37_spill] sm:$0xff] }
 0x19d   : > { %v961_v63 = vadd.f32 %v949_v0, %v2798_v23  ;;  %v713_v21 = vmul.f32 %v2794_v50, %v2438_v29  ;;  %v766_v8 = vadd.f32 %v754_v42, %v712_v31  ;;  %v1010_v4 = vmul.f32 %v2800_v28, %v2376_v5 }
 0x19e   : > { %1267 = vrot.lane.b32.xlu1 %v1117_v61, %s1641_s26  ;;  %v808_v47 = vmul.f32 %v2799_v39, %v2452_v1  ;;  %v765_v27 = vadd.f32 %v753_v12, %v711_v22  ;;  %v963_v18 = vadd.f32 %v951_v34, %v2801_v33  ;;  %v755_v62 = vmul.f32 %v2796_v26, %v2802_v59 }
 0x19f   : > { %v2472_v49 = vadd.f32 %v2788_v35, %v961_v63  ;;  %v809_v52 = vmul.f32 %v2799_v39, %v2455_v46  ;;  %v1052_v43 = vmul.f32 %v2803_v11, %v2116_v40  ;;  %v1106_v32 = vmul.f32 %v2804_v37, %v2412_v51  ;;  %v2805_v35 = vld [vmem:[#allocation14_spill] sm:$0xff] }
 0x1a0   : > { %1178 = vrot.lane.b32.xlu0 %v818_v58, %s1640_s25  ;;  %v820_v48 = vadd.f32 %v808_v47, %v766_v8  ;;  %v819_v44 = vadd.f32 %v807_v3, %v765_v27  ;;  %v2483_v25 = vadd.f32 %v2791_v60, %v963_v18  ;;  %v767_v16 = vadd.f32 %v755_v62, %v713_v21 }
 0x1a1   : > { %v1012_v15 = vmul.f32 %v2805_v35, %v2407_v53  ;;  %v1011_v0 = vmul.f32 %v2800_v28, %v2404_v14  ;;  %v1064_v45 = vadd.f32 %v1052_v43, %v1010_v4  ;;  %v1054_v24 = vmul.f32 %v2806_v57, %v2795_v55  ;;  %v1329_v28 = vld [vmem:[%s2710_s7] sm:$0xff] }
 0x1a2   : > { %1180 = vrot.lane.b32.xlu1 %v820_v48, %s1640_s25  ;;  %v1108_v56 = vmul.f32 %v2807_v17, %v2452_v1  ;;  %v821_v60 = vadd.f32 %v809_v52, %v767_v16  ;;  %v1053_v13 = vmul.f32 %v2803_v11, %v2797_v54  ;;  %v1107_v34 = vmul.f32 %v2804_v37, %v2430_v2  ;;  %v2808_v16 = vld [vmem:[#allocation32_spill] sm:$0xff] }
 0x1a3   : > { %v1118_v50 = vadd.f32 %v1106_v32, %v1064_v45  ;;  %v1013_v31 = vmul.f32 %v2805_v35, %v2438_v29  ;;  %v1066_v61 = vadd.f32 %v1054_v24, %v1012_v15  ;;  %v1055_v30 = vmul.f32 %v2806_v57, %v2802_v59  ;;  %v2809_v45 = vld [vmem:[#allocation34_spill] sm:$0xff] }
 0x1a4   : > { %1190 = vrot.lane.b32.xlu0 %v819_v44, %s1640_s25  ;;  %v1065_v22 = vadd.f32 %v1053_v13, %v1011_v0  ;;  %v1109_v10 = vmul.f32 %v2807_v17, %v2455_v46  ;;  %v1209_v35 = vsub.s32 2, %v2808_v16  ;;  %v1213_v15 = vsub.s32 6, %v2808_v16 }
 0x1a5   : > { %v845_v9 = vpop.permute.xlu0 %844  ;;  %v1120_v58 = vadd.f32 %v1108_v56, %v1066_v61  ;;  %v1067_v63 = vadd.f32 %v1055_v30, %v1013_v31  ;;  %v1288_v24 = vsub.s32 3, %v2808_v16  ;;  %v1292_v17 = vsub.s32 7, %v2808_v16 }
 0x1a6   : > { %1192 = vrot.lane.b32.xlu1 %v821_v60, %s1640_s25  ;;  %v1119_v12 = vadd.f32 %v1107_v34, %v1065_v22  ;;  %v860_v21 = vmul.f32 %v845_v9, %v2376_v5  ;;  %v861_v8 = vmul.f32 %v845_v9, %v2404_v14  ;;  %v1214_v57 = vrot.slane %v2809_v45, %v1213_v15 }
 0x1a7   : > { %v1121_v27 = vadd.f32 %v1109_v10, %v1067_v63  ;;  %v1289_v31 = vrot.slane %v2809_v45, %v1288_v24  ;;  %v1293_v61 = vrot.slane %v2809_v45, %v1292_v17 }
 0x1a8   : > { %1257 = vrot.lane.b32.xlu0 %v1118_v50, %s1641_s26  ;;  %v2550_v9 = vrot.slane %v1214_v57, %v1209_v35 }
 0x1a9   : > { %v850_v26 = vpop.permute.xlu1 %849  ;;  %v887_v42 = vpop.permute.xlu0 %886 }
 0x1aa   : > { %v902_v3 = vmul.f32 %v887_v42, %v2116_v40  ;;  %v903_v23 = vmul.f32 %v887_v42, %v2797_v54  ;;  %1259 = vrot.lane.b32.xlu1 %v1120_v58, %s1641_s26  ;;  %v862_v18 = vmul.f32 %v850_v26, %v2407_v53  ;;  %v863_v62 = vmul.f32 %v850_v26, %v2438_v29 }
 0x1ac   : > { %1269 = vrot.lane.b32.xlu0 %v1119_v12, %s1641_s26  ;;  %v914_v39 = vadd.f32 %v902_v3, %v860_v21  ;;  %v915_v47 = vadd.f32 %v903_v23, %v861_v8  ;;  %v2565_v12 = vrot.slane %v1289_v31, %v1288_v24  ;;  %v2567_v3 = vrot.slane %v1293_v61, %v1288_v24 }
 0x1ad   : > { %v892_v4 = vpop.permute.xlu1 %891  ;;  %v941_v40 = vpop.permute.xlu0 %940 }
 0x1ae   : > { %v904_v54 = vmul.f32 %v892_v4, %v2795_v55  ;;  %v905_v33 = vmul.f32 %v892_v4, %v2802_v59  ;;  %v956_v5 = vmul.f32 %v941_v40, %v2412_v51  ;;  %v957_v14 = vmul.f32 %v941_v40, %v2430_v2  ;;  %1271 = vrot.lane.b32.xlu1 %v1121_v27, %s1641_s26  ;;  %s2661_s26 = scalar_lea.hbm %s2711_s8, %s1510_s21 }
 0x1b0   : > { %1332 = vperm.xlu0 %1568, %v1329_v28   ;;  %v2523_v52 = vadd.f32 %v956_v5, %v914_v39  ;;  %v2525_v48 = vadd.f32 %v957_v14, %v915_v47  ;;  %v916_v43 = vadd.f32 %v904_v54, %v862_v18  ;;  %v917_v55 = vadd.f32 %v905_v33, %v863_v62 }
 0x1b1   : > { %v946_v11 = vpop.permute.xlu1 %945  ;;  %v2533_v32 = vpop.permute.xlu0 %1140 }
 0x1b2   : > { %v958_v59 = vmul.f32 %v946_v11, %v2452_v1  ;;  %v959_v51 = vmul.f32 %v946_v11, %v2455_v46  ;;  %v1210_v46 = vrot.slane %v2809_v45, %v1209_v35 }
 0x1b4   : > { %v2529_v37 = vadd.f32 %v958_v59, %v916_v43  ;;  %v2531_v2 = vadd.f32 %v959_v51, %v917_v55  ;;  %v2548_v60 = vrot.slane %v1210_v46, %v1209_v35 }
 0x1b5   : > { %v2535_v53 = vpop.permute.xlu1 %1145  ;;  %v2537_v29 = vpop.permute.xlu0 %1150 }
 0x1b9   : > { %v2539_v44 = vpop.permute.xlu1 %1155 }
 0x1f2   : > { %v1171_v0 = vpop.permute.xlu0 %1170  ;;  %v1173_v1 = vpop.permute.xlu1 %1172 }
 0x1f6   : > { %v1183_v56 = vpop.permute.xlu0 %1182  ;;  %v1185_v13 = vpop.permute.xlu1 %1184 }
 0x1f7   : > { %v1195_v34 = vsel %vm1194_vm3, %v1171_v0, %v1183_v56  ;;  %v1201_v50 = vsel %vm1194_vm3, %v1183_v56, %v1171_v0  ;;  %v1196_v22 = vsel %vm1194_vm3, %v1173_v1, %v1185_v13  ;;  %v1202_v30 = vsel %vm1194_vm3, %v1185_v13, %v1173_v1 }
 0x1f8   : > { %v1225_v58 = vmul.f32 %v2548_v60, %v1201_v50  ;;  %v1226_v26 = vmul.f32 %v2550_v9, %v1195_v34  ;;  %v1227_v23 = vmul.f32 %v2548_v60, %v1202_v30  ;;  %v1228_v63 = vmul.f32 %v2550_v9, %v1196_v22 }
 0x1f9   : > { %v1162_v34 = vadd.f32 %v2533_v32, %v2369_v6  ;;  %v1163_v50 = vadd.f32 %v2533_v32, %v2371_v7  ;;  %v1164_v22 = vadd.f32 %v2535_v53, %v2417_v20  ;;  %v1165_v30 = vadd.f32 %v2535_v53, %v2419_v38 }
 0x1fa   : > { %v1250_v10 = vpop.permute.xlu0 %1249  ;;  %v1237_v8 = vadd.f32 %v1225_v58, %v2385_v19  ;;  %v1238_v28 = vadd.f32 %v1226_v26, %v2472_v49  ;;  %v1239_v19 = vadd.f32 %v1227_v23, %v2423_v41  ;;  %v1240_v18 = vadd.f32 %v1228_v63, %v2483_v25 }
 0x1fb   : > { %v1252_v42 = vpop.permute.xlu1 %1251 }
 0x1fe   : > { %v1262_v21 = vpop.permute.xlu0 %1261 }
 0x1ff   : > { %v1274_v39 = vsel %vm1273_vm4, %v1250_v10, %v1262_v21  ;;  %v1280_v47 = vsel %vm1273_vm4, %v1262_v21, %v1250_v10  ;;  %v1264_v27 = vpop.permute.xlu1 %1263 }
 0x200   : > { %v1304_v4 = vmul.f32 %v2565_v12, %v1274_v39  ;;  %v1305_v40 = vmul.f32 %v2567_v3, %v1280_v47  ;;  %v1275_v54 = vsel %vm1273_vm4, %v1252_v42, %v1264_v27  ;;  %v1281_v33 = vsel %vm1273_vm4, %v1264_v27, %v1252_v42 }
 0x201   : > { %v1306_v5 = vmul.f32 %v2565_v12, %v1275_v54  ;;  %v1307_v14 = vmul.f32 %v2567_v3, %v1281_v33 }
 0x202   : > { %v1175_v62 = vpop.permute.xlu0 %1174  ;;  %v1317_v49 = vadd.f32 %v1305_v40, %v1238_v28  ;;  %v1316_v43 = vadd.f32 %v1304_v4, %v1237_v8 }
 0x203   : > { %v1319_v11 = vadd.f32 %v1307_v14, %v1240_v18  ;;  %v1318_v55 = vadd.f32 %v1306_v5, %v1239_v19 }
 0x204   : > { %v1177_v59 = vpop.permute.xlu1 %1176 }
 0x205   : > { %v1511_v51 = vpack.c.bf16 %v1319_v11, %v1317_v49  ;;  %v1513_v16 = vpack.c.bf16 %v1318_v55, %v1316_v43 }
 0x206   : > { %v1187_v35 = vpop.permute.xlu0 %1186 }
 0x207   : > { %1512 = vmatprep.subr.bf16.mxu1 %v1511_v51  ;;  %v1197_v41 = vsel %vm1194_vm3, %v1175_v62, %v1187_v35  ;;  %v1203_v0 = vsel %vm1194_vm3, %v1187_v35, %v1175_v62  ;;  %v1166_v35 = vadd.f32 %v2537_v29, %v2523_v52 }
 0x208   : > { %v1189_v15 = vpop.permute.xlu1 %1188  ;;  %1514 = vmatpush1.bf16.msra.mxu1 %v1513_v16  ;;  %v1229_v57 = vmul.f32 %v2548_v60, %v1203_v0  ;;  %v1230_v24 = vmul.f32 %v2550_v9, %v1197_v41  ;;  %v1168_v41 = vadd.f32 %v2539_v44, %v2529_v37 }
 0x209   : > { %v1198_v25 = vsel %vm1194_vm3, %v1177_v59, %v1189_v15  ;;  %v1204_v45 = vsel %vm1194_vm3, %v1189_v15, %v1177_v59  ;;  %v1167_v15 = vadd.f32 %v2537_v29, %v2525_v48 }
 0x20a   : > { %v1254_v1 = vpop.permute.xlu0 %1253  ;;  %v1231_v17 = vmul.f32 %v2548_v60, %v1204_v45  ;;  %v1232_v56 = vmul.f32 %v2550_v9, %v1198_v25  ;;  %v1241_v26 = vadd.f32 %v1229_v57, %v1162_v34  ;;  %v1242_v42 = vadd.f32 %v1230_v24, %v1163_v50 }
 0x20c   : > { %v1256_v46 = vpop.permute.xlu1 %1255  ;;  %v1243_v23 = vadd.f32 %v1231_v17, %v1164_v22  ;;  %v1244_v63 = vadd.f32 %v1232_v56, %v1165_v30  ;;  %v1571_v30 = vld [vmem:[%s1753_s13 + $0x8] sm:$0xff] }
 0x20e   : > { %v1266_v13 = vpop.permute.xlu0 %1265 }
 0x20f   : > { %v1276_v31 = vsel %vm1273_vm4, %v1254_v1, %v1266_v13  ;;  %v1282_v61 = vsel %vm1273_vm4, %v1266_v13, %v1254_v1 }
 0x210   : > { %v1308_v10 = vmul.f32 %v2565_v12, %v1276_v31  ;;  %v1309_v58 = vmul.f32 %v2567_v3, %v1282_v61  ;;  %v1268_v6 = vpop.permute.xlu1 %1267  ;;  %v1570_v61 = vld [vmem:[%s1753_s13] sm:$0xff]  ;;  %s1642_s13 = smov [#allocation2]  }
 0x211   : > { %v1277_v7 = vsel %vm1273_vm4, %v1256_v46, %v1268_v6  ;;  %v1283_v32 = vsel %vm1273_vm4, %v1268_v6, %v1256_v46  ;;  %s1576_s12 = sshll.u32 %s1642_s13, 4  ;;  %s1577_s12 = int_to_ptr.vmem [resolvable:$false] %s1576_s12 }
 0x212   : > { %v1310_v20 = vmul.f32 %v2565_v12, %v1277_v7  ;;  %v1311_v21 = vmul.f32 %v2567_v3, %v1283_v32  ;;  %v1179_v38 = vpop.permute.xlu0 %1178  ;;  %v1320_v53 = vadd.f32 %v1308_v10, %v1241_v26  ;;  %v1321_v8 = vadd.f32 %v1309_v58, %v1242_v42  ;;  %s1578_s17 = scalar_lea.vmem %s1577_s12, 512  ;;  %p1579_p0 = scmp.lt.s32.totalorder %s2663_s23, %s1577_s12 }
 0x213   : > { %p1580_p1 = scmp.lt.s32.totalorder %s1578_s17, %s1572_s9 }
 0x214   : > { %v1322_v39 = vadd.f32 %v1310_v20, %v1243_v23  ;;  %v1323_v47 = vadd.f32 %v1311_v21, %v1244_v63  ;;  %v1181_v27 = vpop.permute.xlu1 %1180 }
 0x215   : > { %p1581_p2 = por %p1580_p1, %p1579_p0 }
 0x216   : > { %v1191_v28 = vpop.permute.xlu0 %1190  ;;  %v1515_v4 = vpack.c.bf16 %v1323_v47, %v1321_v8  ;;  %v1517_v40 = vpack.c.bf16 %v1322_v39, %v1320_v53 }
 0x217   : > { %v1199_v19 = vsel %vm1194_vm3, %v1179_v38, %v1191_v28  ;;  %v1205_v5 = vsel %vm1194_vm3, %v1191_v28, %v1179_v38  ;;  %p1582_p3 = pnand %p1581_p2, %p1575_p13 }
 0x218   : > { %1516 = vmatprep.subr.bf16.mxu1 %v1515_v4  ;;  %v1193_v54 = vpop.permute.xlu1 %1192  ;;  %v1233_v49 = vmul.f32 %v2548_v60, %v1205_v5  ;;  %v1234_v11 = vmul.f32 %v2550_v9, %v1199_v19 }
 0x219   : > { %1518 = vmatpush1.bf16.msra.mxu1 %v1517_v40  ;;  %v1200_v14 = vsel %vm1194_vm3, %v1181_v27, %v1193_v54  ;;  %v1206_v18 = vsel %vm1194_vm3, %v1193_v54, %v1181_v27 }
 0x21a   : > { %v1258_v33 = vpop.permute.xlu0 %1257  ;;  %v1235_v55 = vmul.f32 %v2548_v60, %v1206_v18  ;;  %v1236_v59 = vmul.f32 %v2550_v9, %v1200_v14  ;;  %v1169_v60 = vadd.f32 %v2539_v44, %v2531_v2  ;;  %v1245_v25 = vadd.f32 %v1233_v49, %v1166_v35 }
 0x21b   : > { %v1246_v45 = vadd.f32 %v1234_v11, %v1167_v15 }
 0x21c   : > { %v1260_v62 = vpop.permute.xlu1 %1259  ;;  %v1247_v48 = vadd.f32 %v1235_v55, %v1168_v41  ;;  %v1248_v29 = vadd.f32 %v1236_v59, %v1169_v60 }
 0x21e   : > { %v1270_v43 = vpop.permute.xlu0 %1269 }
 0x21f   : > { %v1278_v51 = vsel %vm1273_vm4, %v1258_v33, %v1270_v43  ;;  %v1284_v16 = vsel %vm1273_vm4, %v1270_v43, %v1258_v33 }
 0x220   : > { %v1312_v9 = vmul.f32 %v2565_v12, %v1278_v51  ;;  %v1313_v0 = vmul.f32 %v2567_v3, %v1284_v16  ;;  %v1272_v1 = vpop.permute.xlu1 %1271 }
 0x221   : > { %v1279_v46 = vsel %vm1273_vm4, %v1260_v62, %v1272_v1  ;;  %v1285_v52 = vsel %vm1273_vm4, %v1272_v1, %v1260_v62 }
 0x222   : > { %v1314_v37 = vmul.f32 %v2565_v12, %v1279_v46  ;;  %v1315_v2 = vmul.f32 %v2567_v3, %v1285_v52  ;;  %v1324_v44 = vadd.f32 %v1312_v9, %v1245_v25  ;;  %v1325_v57 = vadd.f32 %v1313_v0, %v1246_v45 }
 0x224   : > { %v1326_v24 = vadd.f32 %v1314_v37, %v1247_v48  ;;  %v1327_v17 = vadd.f32 %v1315_v2, %v1248_v29 }
 0x226   : > { %v1519_v56 = vpack.c.bf16 %v1327_v17, %v1325_v57  ;;  %v1521_v13 = vpack.c.bf16 %v1326_v24, %v1324_v44 }
 0x228   : > { %1520 = vmatprep.subr.bf16.mxu1 %v1519_v56 }
 0x229   : > { %1522 = vmatpush1.bf16.msra.mxu1 %v1521_v13 }
 0x22c   : > { %1503 = vmatmul.mubr.msk.f32.vlgmr.msra.gmra.mrb[0].mxu1 %vm1335_vm5, %v1328_v36 }
 0x22f   : > { %v1333_v12 = vpop.permute.xlu0 %1332 }
 0x2ff   : > { %v1405_v3 = vpop.f32.mrb[0].mxu1 }
 0x300   : > { %v1406_v34 = vadd.f32 %v1405_v3, %v1333_v12  ;;  %v1407_v50 = vpop.f32.mrb[1].mxu1 }
 0x301   : > { %v1408_v31 = vadd.f32 %v1407_v50, %v1333_v12 }
 0x302   : > { %v1410_v22 = vadd.f32 %v1570_v61, %v1406_v34 }
 0x303   : > { %v1411_v10 = vadd.f32 %v1571_v30, %v1408_v31 }
 0x304   : > { %v1412_v58 = vmax.f32 %v1410_v22, 0.0 }
 0x305   : > { %v1413_v6 = vmax.f32 %v1411_v10, 0.0 }
 0x306   : > { %1414 = vst [vmem:[%s298_s22] sm:$0xff] %v1412_v58 }
 0x307   : > { %1415 = vst [vmem:[%s298_s22 + $0x8] sm:$0xff] %v1413_v6 }
 0x308   : > { %1585 = shalt.err (!%p1582_p3)
}
 0x309   : > { %s1586_s18 = scalar_lea.hbm %s2661_s26, 256  ;;  %s1590_s21 = scalar_lea.hbm %s2711_s8, 512 }
 0x30a   : > { %p1587_p4 = scmp.ne.s32.totalorder %s2661_s26, %s1586_s18  ;;  %p1591_p9 = scmp.lt.u32.totalorder %s2661_s26, %s2711_s8 }
 0x30b   : > { %p1592_p10 = scmp.lt.u32.totalorder %s1590_s21, %s1586_s18  ;;  %p1594_p12 = scmp.lt.u32.totalorder %s1586_s18, %s2661_s26 }
 0x30c   : > { %p1588_p7 = pnand %p1587_p4, %p1726_p5 }
 0x30d   : > { %p1593_p11 = por %p1592_p10, %p1591_p9 }
 0x30e   : > { %p1589_p8 = pneg %p1588_p7 }
 0x30f   : > { %p1595_p13 = por %p1594_p12, %p1593_p11 }
 0x311   : > { %p1596_p0 = pnand %p1595_p13, %p1589_p8 }
 0x313   : > { %1599 = shalt.err (!%p1596_p0)
}
 0x314   : > { %1523 = dma.vmem_to_hbm [thread:$0]  (%p1726_p5), %s2663_s23, 256, %s2661_s26, %s1417_s10  }
 0x315 PF: > { %p1529_p1 = scmp.ge.s32.totalorder %s1634_s30, 2  ;;  %s1443_s25 = sand.u32 1, %s1622_s27  }
 0x316   : > { %s1444_s9 = scalar_lea.sflag [#allocation3], %s1443_s25 }
 0x317   : > { %p1526_p2 = pnand %p1529_p1, %p1730_p6 }
 0x319   : > { %1617 = dma.done.wait (!%p1526_p2), %s1444_s9, 256  }
 0x31a   : > { %1619 = vsyncadd (!%p1526_p2), %s1444_s9, 4294967040  ;;  %p18_p3 = scmp.ge.s32.totalorder %s1713_s11, 4   ;;  %s2810_s27 = smov %s1626_s28 }
 0x31b   : > { %s2811_s28 = smov %s1630_s29  ;;  %s2812_s29 = smov %s1724_s14 }
 0x31c   : > { %s2813_s30 = smov %s1713_s11  ;;  %20 = sbr.rel (!%p18_p3) target bundleno = 3 (0x3), region = 87 }
 0x323   :  { %1449 = vsyncpa [#allocation3], 1 }
 0x324   :  { %1451 = vsyncpa [#allocation3 + $0x1], 1 }

</bundles_post_ra>
